<compile_context>
chip_gen: v5e
topology: v5e:2x2
jax: 0.10.0
libtpu: 0.0.40
codegen_flags: <defaults>
</compile_context>

<pallas_src>
import numpy as np
import jax
import jax.numpy as jnp
from jax.experimental import pallas as pl
from jax.experimental.pallas import tpu as pltpu


def _round_up(x, m):
    return (x + m - 1) // m * m


def _channel_group(C, H):
    """Largest divisor of C with CG*H <= ~256 rows that still leaves >= 2 groups."""
    if H % 8 != 0:
        return C                      # keep blocks equal to the full merged dim
    target = max(1, 256 // H)
    cands = [d for d in range(1, C + 1) if C % d == 0 and d <= target and C // d >= 2]
    return max(cands) if cands else C


def batch_blur(x, kernel, kernel_size=24):
    """Pallas equivalent of BatchBlur.forward (NCHW; shared or per-batch kernel)."""
    B, C, H, W = x.shape
    K = kernel_size
    if K % 2 == 1:
        left = right = top = bottom = K // 2
    else:  # torch ReflectionPad2d((left, right, top, bottom))
        left, right, top, bottom = K // 2, K // 2 - 1, K // 2, K // 2 - 1
    assert top < H and bottom < H and left < W and right < W, \
        "BatchBlur: reflection pad must be smaller than the spatial dims"

    H_p = H + top + bottom            # row-reflected height
    H_pp = _round_up(H_p, 8)          # sublane-aligned (extra rows are never read)
    W_p = W + left + right            # padded width (only used to build taps)
    W_out = _round_up(W, 128)         # lane-dense output width

    # ---- taps: fold column reflection into banded matrices (tiny pre-pass) ---
    per_batch = kernel.ndim != 2
    kern = (kernel.reshape(-1, K, K) if per_batch else kernel[None]).astype(jnp.float32)
    Bk = kern.shape[0]
    assert (not per_batch) or Bk == B
    # Banded matrices over *padded* columns: Tb[b,u,q,j] = k[b,u,q-j], 0<=q-j<K
    q = jnp.arange(W_p)[:, None]
    j = jnp.arange(W_out)[None, :]
    d = q - j
    valid = (d >= 0) & (d < K) & (j < W)          # j >= W -> zero taps (lane-pad cols)
    Tb = jnp.where(valid[None, None], kern[:, :, jnp.clip(d, 0, K - 1)], 0.0)
    # Fold column reflection: padded column q reads original column cmap(q).
    m = jnp.arange(W_p) - left
    cmap = jnp.where(m < 0, -m, jnp.where(m >= W, 2 * W - 2 - m, m))
    Tc = jnp.zeros((Bk, K, W, W_out), jnp.float32).at[:, :, cmap, :].add(Tb)
    taps = Tc.reshape(Bk, K * W, W_out).astype(jnp.bfloat16)   # (Bk, K*W, W_out)

    # ---- input: reflect rows once in the wrapper, merge (C, H_pp) ------------
    xr = jnp.pad(x, ((0, 0), (0, 0), (top, bottom), (0, 0)), mode="reflect")
    if H_pp != H_p:
        xr = jnp.pad(xr, ((0, 0), (0, 0), (0, H_pp - H_p), (0, 0)))
    xr = xr.astype(jnp.bfloat16).reshape(B, C * H_pp, W)

    CG = _channel_group(C, H)         # channels folded into the matmul M dim
    G = C // CG

    # ---- kernel ---------------------------------------------------------------
    def _kernel(xr_ref, t_ref, o_ref, xcat_ref):
        # xr_ref  : (CG*H_pp, W)  bf16  row-reflected input rows (CG channels)
        # t_ref   : (K*W, W_out)  bf16  reflection-folded banded taps
        # o_ref   : (CG*H, W_out)       lane-dense output rows
        # xcat_ref: (CG*H, K*W)   bf16  im2col scratch
        for c in range(CG):                       # static unroll
            for u in range(K):                    # K shifted row windows
                xcat_ref[c * H:(c + 1) * H, u * W:(u + 1) * W] = \
                    xr_ref[c * H_pp + u:c * H_pp + u + H, :]
        # Single MXU matmul per grid step: (CG*H, K*W) @ (K*W, W_out), f32 acc.
        o_ref[...] = jnp.dot(xcat_ref[...], t_ref[...],
                             preferred_element_type=jnp.float32).astype(o_ref.dtype)

    t_index = (lambda b, g: (b, 0, 0)) if per_batch else (lambda b, g: (0, 0, 0))
    out = pl.pallas_call(
        _kernel,
        out_shape=jax.ShapeDtypeStruct((B, C * H, W_out), x.dtype),
        grid=(B, G),
        in_specs=[
            pl.BlockSpec((None, CG * H_pp, W), lambda b, g: (b, g, 0)),
            pl.BlockSpec((None, K * W, W_out), t_index),
        ],
        out_specs=pl.BlockSpec((None, CG * H, W_out), lambda b, g: (b, g, 0)),
        scratch_shapes=[pltpu.VMEM((CG * H, K * W), jnp.bfloat16)],
        compiler_params=pltpu.CompilerParams(
            dimension_semantics=("parallel", "parallel"),
        ),
    )(xr, taps)
    out = out.reshape(B, C, H, W_out)
    return out if W_out == W else out[..., :W]    # drop lane-pad columns if any


if __name__ == "__main__":
    B, C, H, W = 2, 4, 16, 16
    K = 24  # BatchBlur default kernel_size (even -> asymmetric reflection pad)

    key = jax.random.PRNGKey(0)
    kx, kk = jax.random.split(key)
    x = jax.random.normal(kx, (B, C, H, W), dtype=jnp.float32)
    # deterministic per-batch blur kernels, normalized to sum to 1 (PSF-like)
    raw = jax.random.uniform(kk, (B, K, K), dtype=jnp.float32)
    kern = raw / jnp.sum(raw, axis=(1, 2), keepdims=True)

    out = jax.block_until_ready(batch_blur(x, kern, kernel_size=K))

    # numpy reference: cross-correlation on the reflect-padded input (F.conv2d path)
    left, right, top, bottom = K // 2, K // 2 - 1, K // 2, K // 2 - 1
    xp = np.pad(np.asarray(x), ((0, 0), (0, 0), (top, bottom), (left, right)),
                mode="reflect")
    kk_np = np.asarray(kern)
    ref = np.zeros((B, C, H, W), np.float32)
    for u in range(K):
        for v in range(K):
            ref += xp[:, :, u:u + H, v:v + W] * kk_np[:, u, v][:, None, None, None]

    # tolerance covers bf16 MXU operands with f32 accumulation
    np.testing.assert_allclose(np.asarray(out), ref, rtol=2e-2, atol=5e-3)
    print("KERNEL_OK")
</pallas_src>

<mosaic_0001>
module attributes {stable_mosaic.version = 11 : i64} {
  func.func @_kernel(%arg0: i32, %arg1: i32, %arg2: memref<1x80x16xbf16, #tpu.memory_space<vmem>>, %arg3: memref<1x384x128xbf16, #tpu.memory_space<vmem>>, %arg4: memref<1x32x128xf32, #tpu.memory_space<vmem>>, %arg5: memref<32x384xbf16, #tpu.memory_space<vmem>>) attributes {dimension_semantics = [#tpu.dimension_semantics<parallel>, #tpu.dimension_semantics<parallel>], iteration_bounds = array<i64: 2, 2>, scalar_prefetch = 0 : i64, scratch_operands = 1 : i64, tpu.core_type = #tpu.core_type<tc>, window_params = [{transform_indices = @transform_0, window_bounds = array<i64: 1, 80, 16>}, {transform_indices = @transform_1, window_bounds = array<i64: 1, 384, 128>}, {transform_indices = @transform_2, window_bounds = array<i64: 1, 32, 128>}]} {
    %c0 = arith.constant 0 : index
    %c0_0 = arith.constant 0 : index
    %c0_1 = arith.constant 0 : index
    %0 = vector.load %arg2[%c0, %c0_0, %c0_1] : memref<1x80x16xbf16, #tpu.memory_space<vmem>>, vector<1x16x16xbf16>
    %1 = vector.shape_cast %0 : vector<1x16x16xbf16> to vector<16x16xbf16>
    %c0_2 = arith.constant 0 : index
    %c0_3 = arith.constant 0 : index
    %2 = vector.load %arg5[%c0_2, %c0_3] : memref<32x384xbf16, #tpu.memory_space<vmem>>, vector<16x16xbf16>
    tpu.vector_store %arg5[%c0_2, %c0_3], %1 {strides = array<i32>} : memref<32x384xbf16, #tpu.memory_space<vmem>>, vector<16x16xbf16>,
    %c0_4 = arith.constant 0 : index
    %c1 = arith.constant 1 : index
    %c0_5 = arith.constant 0 : index
    %3 = vector.load %arg2[%c0_4, %c1, %c0_5] : memref<1x80x16xbf16, #tpu.memory_space<vmem>>, vector<1x16x16xbf16>
    %4 = vector.shape_cast %3 : vector<1x16x16xbf16> to vector<16x16xbf16>
    %c0_6 = arith.constant 0 : index
    %c16 = arith.constant 16 : index
    %5 = vector.load %arg5[%c0_6, %c16] : memref<32x384xbf16, #tpu.memory_space<vmem>>, vector<16x16xbf16>
    tpu.vector_store %arg5[%c0_6, %c16], %4 {strides = array<i32>} : memref<32x384xbf16, #tpu.memory_space<vmem>>, vector<16x16xbf16>,
    %c0_7 = arith.constant 0 : index
    %c2 = arith.constant 2 : index
    %c0_8 = arith.constant 0 : index
    %6 = vector.load %arg2[%c0_7, %c2, %c0_8] : memref<1x80x16xbf16, #tpu.memory_space<vmem>>, vector<1x16x16xbf16>
    %7 = vector.shape_cast %6 : vector<1x16x16xbf16> to vector<16x16xbf16>
    %c0_9 = arith.constant 0 : index
    %c32 = arith.constant 32 : index
    %8 = vector.load %arg5[%c0_9, %c32] : memref<32x384xbf16, #tpu.memory_space<vmem>>, vector<16x16xbf16>
    tpu.vector_store %arg5[%c0_9, %c32], %7 {strides = array<i32>} : memref<32x384xbf16, #tpu.memory_space<vmem>>, vector<16x16xbf16>,
    %c0_10 = arith.constant 0 : index
    %c3 = arith.constant 3 : index
    %c0_11 = arith.constant 0 : index
    %9 = vector.load %arg2[%c0_10, %c3, %c0_11] : memref<1x80x16xbf16, #tpu.memory_space<vmem>>, vector<1x16x16xbf16>
    %10 = vector.shape_cast %9 : vector<1x16x16xbf16> to vector<16x16xbf16>
    %c0_12 = arith.constant 0 : index
    %c48 = arith.constant 48 : index
    %11 = vector.load %arg5[%c0_12, %c48] : memref<32x384xbf16, #tpu.memory_space<vmem>>, vector<16x16xbf16>
    tpu.vector_store %arg5[%c0_12, %c48], %10 {strides = array<i32>} : memref<32x384xbf16, #tpu.memory_space<vmem>>, vector<16x16xbf16>,
    %c0_13 = arith.constant 0 : index
    %c4 = arith.constant 4 : index
    %c0_14 = arith.constant 0 : index
    %12 = vector.load %arg2[%c0_13, %c4, %c0_14] : memref<1x80x16xbf16, #tpu.memory_space<vmem>>, vector<1x16x16xbf16>
    %13 = vector.shape_cast %12 : vector<1x16x16xbf16> to vector<16x16xbf16>
    %c0_15 = arith.constant 0 : index
    %c64 = arith.constant 64 : index
    %14 = vector.load %arg5[%c0_15, %c64] : memref<32x384xbf16, #tpu.memory_space<vmem>>, vector<16x16xbf16>
    tpu.vector_store %arg5[%c0_15, %c64], %13 {strides = array<i32>} : memref<32x384xbf16, #tpu.memory_space<vmem>>, vector<16x16xbf16>,
    %c0_16 = arith.constant 0 : index
    %c5 = arith.constant 5 : index
    %c0_17 = arith.constant 0 : index
    %15 = vector.load %arg2[%c0_16, %c5, %c0_17] : memref<1x80x16xbf16, #tpu.memory_space<vmem>>, vector<1x16x16xbf16>
    %16 = vector.shape_cast %15 : vector<1x16x16xbf16> to vector<16x16xbf16>
    %c0_18 = arith.constant 0 : index
    %c80 = arith.constant 80 : index
    %17 = vector.load %arg5[%c0_18, %c80] : memref<32x384xbf16, #tpu.memory_space<vmem>>, vector<16x16xbf16>
    tpu.vector_store %arg5[%c0_18, %c80], %16 {strides = array<i32>} : memref<32x384xbf16, #tpu.memory_space<vmem>>, vector<16x16xbf16>,
    %c0_19 = arith.constant 0 : index
    %c6 = arith.constant 6 : index
    %c0_20 = arith.constant 0 : index
    %18 = vector.load %arg2[%c0_19, %c6, %c0_20] : memref<1x80x16xbf16, #tpu.memory_space<vmem>>, vector<1x16x16xbf16>
    %19 = vector.shape_cast %18 : vector<1x16x16xbf16> to vector<16x16xbf16>
    %c0_21 = arith.constant 0 : index
    %c96 = arith.constant 96 : index
    %20 = vector.load %arg5[%c0_21, %c96] : memref<32x384xbf16, #tpu.memory_space<vmem>>, vector<16x16xbf16>
    tpu.vector_store %arg5[%c0_21, %c96], %19 {strides = array<i32>} : memref<32x384xbf16, #tpu.memory_space<vmem>>, vector<16x16xbf16>,
    %c0_22 = arith.constant 0 : index
    %c7 = arith.constant 7 : index
    %c0_23 = arith.constant 0 : index
    %21 = vector.load %arg2[%c0_22, %c7, %c0_23] : memref<1x80x16xbf16, #tpu.memory_space<vmem>>, vector<1x16x16xbf16>
    %22 = vector.shape_cast %21 : vector<1x16x16xbf16> to vector<16x16xbf16>
    %c0_24 = arith.constant 0 : index
    %c112 = arith.constant 112 : index
    %23 = vector.load %arg5[%c0_24, %c112] : memref<32x384xbf16, #tpu.memory_space<vmem>>, vector<16x16xbf16>
    tpu.vector_store %arg5[%c0_24, %c112], %22 {strides = array<i32>} : memref<32x384xbf16, #tpu.memory_space<vmem>>, vector<16x16xbf16>,
    %c0_25 = arith.constant 0 : index
    %c8 = arith.constant 8 : index
    %c0_26 = arith.constant 0 : index
    %24 = vector.load %arg2[%c0_25, %c8, %c0_26] : memref<1x80x16xbf16, #tpu.memory_space<vmem>>, vector<1x16x16xbf16>
    %25 = vector.shape_cast %24 : vector<1x16x16xbf16> to vector<16x16xbf16>
    %c0_27 = arith.constant 0 : index
    %c128 = arith.constant 128 : index
    %26 = vector.load %arg5[%c0_27, %c128] : memref<32x384xbf16, #tpu.memory_space<vmem>>, vector<16x16xbf16>
    tpu.vector_store %arg5[%c0_27, %c128], %25 {strides = array<i32>} : memref<32x384xbf16, #tpu.memory_space<vmem>>, vector<16x16xbf16>,
    %c0_28 = arith.constant 0 : index
    %c9 = arith.constant 9 : index
    %c0_29 = arith.constant 0 : index
    %27 = vector.load %arg2[%c0_28, %c9, %c0_29] : memref<1x80x16xbf16, #tpu.memory_space<vmem>>, vector<1x16x16xbf16>
    %28 = vector.shape_cast %27 : vector<1x16x16xbf16> to vector<16x16xbf16>
    %c0_30 = arith.constant 0 : index
    %c144 = arith.constant 144 : index
    %29 = vector.load %arg5[%c0_30, %c144] : memref<32x384xbf16, #tpu.memory_space<vmem>>, vector<16x16xbf16>
    tpu.vector_store %arg5[%c0_30, %c144], %28 {strides = array<i32>} : memref<32x384xbf16, #tpu.memory_space<vmem>>, vector<16x16xbf16>,
    %c0_31 = arith.constant 0 : index
    %c10 = arith.constant 10 : index
    %c0_32 = arith.constant 0 : index
    %30 = vector.load %arg2[%c0_31, %c10, %c0_32] : memref<1x80x16xbf16, #tpu.memory_space<vmem>>, vector<1x16x16xbf16>
    %31 = vector.shape_cast %30 : vector<1x16x16xbf16> to vector<16x16xbf16>
    %c0_33 = arith.constant 0 : index
    %c160 = arith.constant 160 : index
    %32 = vector.load %arg5[%c0_33, %c160] : memref<32x384xbf16, #tpu.memory_space<vmem>>, vector<16x16xbf16>
    tpu.vector_store %arg5[%c0_33, %c160], %31 {strides = array<i32>} : memref<32x384xbf16, #tpu.memory_space<vmem>>, vector<16x16xbf16>,
    %c0_34 = arith.constant 0 : index
    %c11 = arith.constant 11 : index
    %c0_35 = arith.constant 0 : index
    %33 = vector.load %arg2[%c0_34, %c11, %c0_35] : memref<1x80x16xbf16, #tpu.memory_space<vmem>>, vector<1x16x16xbf16>
    %34 = vector.shape_cast %33 : vector<1x16x16xbf16> to vector<16x16xbf16>
    %c0_36 = arith.constant 0 : index
    %c176 = arith.constant 176 : index
    %35 = vector.load %arg5[%c0_36, %c176] : memref<32x384xbf16, #tpu.memory_space<vmem>>, vector<16x16xbf16>
    tpu.vector_store %arg5[%c0_36, %c176], %34 {strides = array<i32>} : memref<32x384xbf16, #tpu.memory_space<vmem>>, vector<16x16xbf16>,
    %c0_37 = arith.constant 0 : index
    %c12 = arith.constant 12 : index
    %c0_38 = arith.constant 0 : index
    %36 = vector.load %arg2[%c0_37, %c12, %c0_38] : memref<1x80x16xbf16, #tpu.memory_space<vmem>>, vector<1x16x16xbf16>
    %37 = vector.shape_cast %36 : vector<1x16x16xbf16> to vector<16x16xbf16>
    %c0_39 = arith.constant 0 : index
    %c192 = arith.constant 192 : index
    %38 = vector.load %arg5[%c0_39, %c192] : memref<32x384xbf16, #tpu.memory_space<vmem>>, vector<16x16xbf16>
    tpu.vector_store %arg5[%c0_39, %c192], %37 {strides = array<i32>} : memref<32x384xbf16, #tpu.memory_space<vmem>>, vector<16x16xbf16>,
    %c0_40 = arith.constant 0 : index
    %c13 = arith.constant 13 : index
    %c0_41 = arith.constant 0 : index
    %39 = vector.load %arg2[%c0_40, %c13, %c0_41] : memref<1x80x16xbf16, #tpu.memory_space<vmem>>, vector<1x16x16xbf16>
    %40 = vector.shape_cast %39 : vector<1x16x16xbf16> to vector<16x16xbf16>
    %c0_42 = arith.constant 0 : index
    %c208 = arith.constant 208 : index
    %41 = vector.load %arg5[%c0_42, %c208] : memref<32x384xbf16, #tpu.memory_space<vmem>>, vector<16x16xbf16>
    tpu.vector_store %arg5[%c0_42, %c208], %40 {strides = array<i32>} : memref<32x384xbf16, #tpu.memory_space<vmem>>, vector<16x16xbf16>,
    %c0_43 = arith.constant 0 : index
    %c14 = arith.constant 14 : index
    %c0_44 = arith.constant 0 : index
    %42 = vector.load %arg2[%c0_43, %c14, %c0_44] : memref<1x80x16xbf16, #tpu.memory_space<vmem>>, vector<1x16x16xbf16>
    %43 = vector.shape_cast %42 : vector<1x16x16xbf16> to vector<16x16xbf16>
    %c0_45 = arith.constant 0 : index
    %c224 = arith.constant 224 : index
    %44 = vector.load %arg5[%c0_45, %c224] : memref<32x384xbf16, #tpu.memory_space<vmem>>, vector<16x16xbf16>
    tpu.vector_store %arg5[%c0_45, %c224], %43 {strides = array<i32>} : memref<32x384xbf16, #tpu.memory_space<vmem>>, vector<16x16xbf16>,
    %c0_46 = arith.constant 0 : index
    %c15 = arith.constant 15 : index
    %c0_47 = arith.constant 0 : index
    %45 = vector.load %arg2[%c0_46, %c15, %c0_47] : memref<1x80x16xbf16, #tpu.memory_space<vmem>>, vector<1x16x16xbf16>
    %46 = vector.shape_cast %45 : vector<1x16x16xbf16> to vector<16x16xbf16>
    %c0_48 = arith.constant 0 : index
    %c240 = arith.constant 240 : index
    %47 = vector.load %arg5[%c0_48, %c240] : memref<32x384xbf16, #tpu.memory_space<vmem>>, vector<16x16xbf16>
    tpu.vector_store %arg5[%c0_48, %c240], %46 {strides = array<i32>} : memref<32x384xbf16, #tpu.memory_space<vmem>>, vector<16x16xbf16>,
    %c0_49 = arith.constant 0 : index
    %c16_50 = arith.constant 16 : index
    %c0_51 = arith.constant 0 : index
    %48 = vector.load %arg2[%c0_49, %c16_50, %c0_51] : memref<1x80x16xbf16, #tpu.memory_space<vmem>>, vector<1x16x16xbf16>
    %49 = vector.shape_cast %48 : vector<1x16x16xbf16> to vector<16x16xbf16>
    %c0_52 = arith.constant 0 : index
    %c256 = arith.constant 256 : index
    %50 = vector.load %arg5[%c0_52, %c256] : memref<32x384xbf16, #tpu.memory_space<vmem>>, vector<16x16xbf16>
    tpu.vector_store %arg5[%c0_52, %c256], %49 {strides = array<i32>} : memref<32x384xbf16, #tpu.memory_space<vmem>>, vector<16x16xbf16>,
    %c0_53 = arith.constant 0 : index
    %c17 = arith.constant 17 : index
    %c0_54 = arith.constant 0 : index
    %51 = vector.load %arg2[%c0_53, %c17, %c0_54] : memref<1x80x16xbf16, #tpu.memory_space<vmem>>, vector<1x16x16xbf16>
    %52 = vector.shape_cast %51 : vector<1x16x16xbf16> to vector<16x16xbf16>
    %c0_55 = arith.constant 0 : index
    %c272 = arith.constant 272 : index
    %53 = vector.load %arg5[%c0_55, %c272] : memref<32x384xbf16, #tpu.memory_space<vmem>>, vector<16x16xbf16>
    tpu.vector_store %arg5[%c0_55, %c272], %52 {strides = array<i32>} : memref<32x384xbf16, #tpu.memory_space<vmem>>, vector<16x16xbf16>,
    %c0_56 = arith.constant 0 : index
    %c18 = arith.constant 18 : index
    %c0_57 = arith.constant 0 : index
    %54 = vector.load %arg2[%c0_56, %c18, %c0_57] : memref<1x80x16xbf16, #tpu.memory_space<vmem>>, vector<1x16x16xbf16>
    %55 = vector.shape_cast %54 : vector<1x16x16xbf16> to vector<16x16xbf16>
    %c0_58 = arith.constant 0 : index
    %c288 = arith.constant 288 : index
    %56 = vector.load %arg5[%c0_58, %c288] : memref<32x384xbf16, #tpu.memory_space<vmem>>, vector<16x16xbf16>
    tpu.vector_store %arg5[%c0_58, %c288], %55 {strides = array<i32>} : memref<32x384xbf16, #tpu.memory_space<vmem>>, vector<16x16xbf16>,
    %c0_59 = arith.constant 0 : index
    %c19 = arith.constant 19 : index
    %c0_60 = arith.constant 0 : index
    %57 = vector.load %arg2[%c0_59, %c19, %c0_60] : memref<1x80x16xbf16, #tpu.memory_space<vmem>>, vector<1x16x16xbf16>
    %58 = vector.shape_cast %57 : vector<1x16x16xbf16> to vector<16x16xbf16>
    %c0_61 = arith.constant 0 : index
    %c304 = arith.constant 304 : index
    %59 = vector.load %arg5[%c0_61, %c304] : memref<32x384xbf16, #tpu.memory_space<vmem>>, vector<16x16xbf16>
    tpu.vector_store %arg5[%c0_61, %c304], %58 {strides = array<i32>} : memref<32x384xbf16, #tpu.memory_space<vmem>>, vector<16x16xbf16>,
    %c0_62 = arith.constant 0 : index
    %c20 = arith.constant 20 : index
    %c0_63 = arith.constant 0 : index
    %60 = vector.load %arg2[%c0_62, %c20, %c0_63] : memref<1x80x16xbf16, #tpu.memory_space<vmem>>, vector<1x16x16xbf16>
    %61 = vector.shape_cast %60 : vector<1x16x16xbf16> to vector<16x16xbf16>
    %c0_64 = arith.constant 0 : index
    %c320 = arith.constant 320 : index
    %62 = vector.load %arg5[%c0_64, %c320] : memref<32x384xbf16, #tpu.memory_space<vmem>>, vector<16x16xbf16>
    tpu.vector_store %arg5[%c0_64, %c320], %61 {strides = array<i32>} : memref<32x384xbf16, #tpu.memory_space<vmem>>, vector<16x16xbf16>,
    %c0_65 = arith.constant 0 : index
    %c21 = arith.constant 21 : index
    %c0_66 = arith.constant 0 : index
    %63 = vector.load %arg2[%c0_65, %c21, %c0_66] : memref<1x80x16xbf16, #tpu.memory_space<vmem>>, vector<1x16x16xbf16>
    %64 = vector.shape_cast %63 : vector<1x16x16xbf16> to vector<16x16xbf16>
    %c0_67 = arith.constant 0 : index
    %c336 = arith.constant 336 : index
    %65 = vector.load %arg5[%c0_67, %c336] : memref<32x384xbf16, #tpu.memory_space<vmem>>, vector<16x16xbf16>
    tpu.vector_store %arg5[%c0_67, %c336], %64 {strides = array<i32>} : memref<32x384xbf16, #tpu.memory_space<vmem>>, vector<16x16xbf16>,
    %c0_68 = arith.constant 0 : index
    %c22 = arith.constant 22 : index
    %c0_69 = arith.constant 0 : index
    %66 = vector.load %arg2[%c0_68, %c22, %c0_69] : memref<1x80x16xbf16, #tpu.memory_space<vmem>>, vector<1x16x16xbf16>
    %67 = vector.shape_cast %66 : vector<1x16x16xbf16> to vector<16x16xbf16>
    %c0_70 = arith.constant 0 : index
    %c352 = arith.constant 352 : index
    %68 = vector.load %arg5[%c0_70, %c352] : memref<32x384xbf16, #tpu.memory_space<vmem>>, vector<16x16xbf16>
    tpu.vector_store %arg5[%c0_70, %c352], %67 {strides = array<i32>} : memref<32x384xbf16, #tpu.memory_space<vmem>>, vector<16x16xbf16>,
    %c0_71 = arith.constant 0 : index
    %c23 = arith.constant 23 : index
    %c0_72 = arith.constant 0 : index
    %69 = vector.load %arg2[%c0_71, %c23, %c0_72] : memref<1x80x16xbf16, #tpu.memory_space<vmem>>, vector<1x16x16xbf16>
    %70 = vector.shape_cast %69 : vector<1x16x16xbf16> to vector<16x16xbf16>
    %c0_73 = arith.constant 0 : index
    %c368 = arith.constant 368 : index
    %71 = vector.load %arg5[%c0_73, %c368] : memref<32x384xbf16, #tpu.memory_space<vmem>>, vector<16x16xbf16>
    tpu.vector_store %arg5[%c0_73, %c368], %70 {strides = array<i32>} : memref<32x384xbf16, #tpu.memory_space<vmem>>, vector<16x16xbf16>,
    %c0_74 = arith.constant 0 : index
    %c40 = arith.constant 40 : index
    %c0_75 = arith.constant 0 : index
    %72 = vector.load %arg2[%c0_74, %c40, %c0_75] : memref<1x80x16xbf16, #tpu.memory_space<vmem>>, vector<1x16x16xbf16>
    %73 = vector.shape_cast %72 : vector<1x16x16xbf16> to vector<16x16xbf16>
    %c16_76 = arith.constant 16 : index
    %c0_77 = arith.constant 0 : index
    %74 = vector.load %arg5[%c16_76, %c0_77] : memref<32x384xbf16, #tpu.memory_space<vmem>>, vector<16x16xbf16>
    tpu.vector_store %arg5[%c16_76, %c0_77], %73 {strides = array<i32>} : memref<32x384xbf16, #tpu.memory_space<vmem>>, vector<16x16xbf16>,
    %c0_78 = arith.constant 0 : index
    %c41 = arith.constant 41 : index
    %c0_79 = arith.constant 0 : index
    %75 = vector.load %arg2[%c0_78, %c41, %c0_79] : memref<1x80x16xbf16, #tpu.memory_space<vmem>>, vector<1x16x16xbf16>
    %76 = vector.shape_cast %75 : vector<1x16x16xbf16> to vector<16x16xbf16>
    %c16_80 = arith.constant 16 : index
    %c16_81 = arith.constant 16 : index
    %77 = vector.load %arg5[%c16_80, %c16_81] : memref<32x384xbf16, #tpu.memory_space<vmem>>, vector<16x16xbf16>
    tpu.vector_store %arg5[%c16_80, %c16_81], %76 {strides = array<i32>} : memref<32x384xbf16, #tpu.memory_space<vmem>>, vector<16x16xbf16>,
    %c0_82 = arith.constant 0 : index
    %c42 = arith.constant 42 : index
    %c0_83 = arith.constant 0 : index
    %78 = vector.load %arg2[%c0_82, %c42, %c0_83] : memref<1x80x16xbf16, #tpu.memory_space<vmem>>, vector<1x16x16xbf16>
    %79 = vector.shape_cast %78 : vector<1x16x16xbf16> to vector<16x16xbf16>
    %c16_84 = arith.constant 16 : index
    %c32_85 = arith.constant 32 : index
    %80 = vector.load %arg5[%c16_84, %c32_85] : memref<32x384xbf16, #tpu.memory_space<vmem>>, vector<16x16xbf16>
    tpu.vector_store %arg5[%c16_84, %c32_85], %79 {strides = array<i32>} : memref<32x384xbf16, #tpu.memory_space<vmem>>, vector<16x16xbf16>,
    %c0_86 = arith.constant 0 : index
    %c43 = arith.constant 43 : index
    %c0_87 = arith.constant 0 : index
    %81 = vector.load %arg2[%c0_86, %c43, %c0_87] : memref<1x80x16xbf16, #tpu.memory_space<vmem>>, vector<1x16x16xbf16>
    %82 = vector.shape_cast %81 : vector<1x16x16xbf16> to vector<16x16xbf16>
    %c16_88 = arith.constant 16 : index
    %c48_89 = arith.constant 48 : index
    %83 = vector.load %arg5[%c16_88, %c48_89] : memref<32x384xbf16, #tpu.memory_space<vmem>>, vector<16x16xbf16>
    tpu.vector_store %arg5[%c16_88, %c48_89], %82 {strides = array<i32>} : memref<32x384xbf16, #tpu.memory_space<vmem>>, vector<16x16xbf16>,
    %c0_90 = arith.constant 0 : index
    %c44 = arith.constant 44 : index
    %c0_91 = arith.constant 0 : index
    %84 = vector.load %arg2[%c0_90, %c44, %c0_91] : memref<1x80x16xbf16, #tpu.memory_space<vmem>>, vector<1x16x16xbf16>
    %85 = vector.shape_cast %84 : vector<1x16x16xbf16> to vector<16x16xbf16>
    %c16_92 = arith.constant 16 : index
    %c64_93 = arith.constant 64 : index
    %86 = vector.load %arg5[%c16_92, %c64_93] : memref<32x384xbf16, #tpu.memory_space<vmem>>, vector<16x16xbf16>
    tpu.vector_store %arg5[%c16_92, %c64_93], %85 {strides = array<i32>} : memref<32x384xbf16, #tpu.memory_space<vmem>>, vector<16x16xbf16>,
    %c0_94 = arith.constant 0 : index
    %c45 = arith.constant 45 : index
    %c0_95 = arith.constant 0 : index
    %87 = vector.load %arg2[%c0_94, %c45, %c0_95] : memref<1x80x16xbf16, #tpu.memory_space<vmem>>, vector<1x16x16xbf16>
    %88 = vector.shape_cast %87 : vector<1x16x16xbf16> to vector<16x16xbf16>
    %c16_96 = arith.constant 16 : index
    %c80_97 = arith.constant 80 : index
    %89 = vector.load %arg5[%c16_96, %c80_97] : memref<32x384xbf16, #tpu.memory_space<vmem>>, vector<16x16xbf16>
    tpu.vector_store %arg5[%c16_96, %c80_97], %88 {strides = array<i32>} : memref<32x384xbf16, #tpu.memory_space<vmem>>, vector<16x16xbf16>,
    %c0_98 = arith.constant 0 : index
    %c46 = arith.constant 46 : index
    %c0_99 = arith.constant 0 : index
    %90 = vector.load %arg2[%c0_98, %c46, %c0_99] : memref<1x80x16xbf16, #tpu.memory_space<vmem>>, vector<1x16x16xbf16>
    %91 = vector.shape_cast %90 : vector<1x16x16xbf16> to vector<16x16xbf16>
    %c16_100 = arith.constant 16 : index
    %c96_101 = arith.constant 96 : index
    %92 = vector.load %arg5[%c16_100, %c96_101] : memref<32x384xbf16, #tpu.memory_space<vmem>>, vector<16x16xbf16>
    tpu.vector_store %arg5[%c16_100, %c96_101], %91 {strides = array<i32>} : memref<32x384xbf16, #tpu.memory_space<vmem>>, vector<16x16xbf16>,
    %c0_102 = arith.constant 0 : index
    %c47 = arith.constant 47 : index
    %c0_103 = arith.constant 0 : index
    %93 = vector.load %arg2[%c0_102, %c47, %c0_103] : memref<1x80x16xbf16, #tpu.memory_space<vmem>>, vector<1x16x16xbf16>
    %94 = vector.shape_cast %93 : vector<1x16x16xbf16> to vector<16x16xbf16>
    %c16_104 = arith.constant 16 : index
    %c112_105 = arith.constant 112 : index
    %95 = vector.load %arg5[%c16_104, %c112_105] : memref<32x384xbf16, #tpu.memory_space<vmem>>, vector<16x16xbf16>
    tpu.vector_store %arg5[%c16_104, %c112_105], %94 {strides = array<i32>} : memref<32x384xbf16, #tpu.memory_space<vmem>>, vector<16x16xbf16>,
    %c0_106 = arith.constant 0 : index
    %c48_107 = arith.constant 48 : index
    %c0_108 = arith.constant 0 : index
    %96 = vector.load %arg2[%c0_106, %c48_107, %c0_108] : memref<1x80x16xbf16, #tpu.memory_space<vmem>>, vector<1x16x16xbf16>
    %97 = vector.shape_cast %96 : vector<1x16x16xbf16> to vector<16x16xbf16>
    %c16_109 = arith.constant 16 : index
    %c128_110 = arith.constant 128 : index
    %98 = vector.load %arg5[%c16_109, %c128_110] : memref<32x384xbf16, #tpu.memory_space<vmem>>, vector<16x16xbf16>
    tpu.vector_store %arg5[%c16_109, %c128_110], %97 {strides = array<i32>} : memref<32x384xbf16, #tpu.memory_space<vmem>>, vector<16x16xbf16>,
    %c0_111 = arith.constant 0 : index
    %c49 = arith.constant 49 : index
    %c0_112 = arith.constant 0 : index
    %99 = vector.load %arg2[%c0_111, %c49, %c0_112] : memref<1x80x16xbf16, #tpu.memory_space<vmem>>, vector<1x16x16xbf16>
    %100 = vector.shape_cast %99 : vector<1x16x16xbf16> to vector<16x16xbf16>
    %c16_113 = arith.constant 16 : index
    %c144_114 = arith.constant 144 : index
    %101 = vector.load %arg5[%c16_113, %c144_114] : memref<32x384xbf16, #tpu.memory_space<vmem>>, vector<16x16xbf16>
    tpu.vector_store %arg5[%c16_113, %c144_114], %100 {strides = array<i32>} : memref<32x384xbf16, #tpu.memory_space<vmem>>, vector<16x16xbf16>,
    %c0_115 = arith.constant 0 : index
    %c50 = arith.constant 50 : index
    %c0_116 = arith.constant 0 : index
    %102 = vector.load %arg2[%c0_115, %c50, %c0_116] : memref<1x80x16xbf16, #tpu.memory_space<vmem>>, vector<1x16x16xbf16>
    %103 = vector.shape_cast %102 : vector<1x16x16xbf16> to vector<16x16xbf16>
    %c16_117 = arith.constant 16 : index
    %c160_118 = arith.constant 160 : index
    %104 = vector.load %arg5[%c16_117, %c160_118] : memref<32x384xbf16, #tpu.memory_space<vmem>>, vector<16x16xbf16>
    tpu.vector_store %arg5[%c16_117, %c160_118], %103 {strides = array<i32>} : memref<32x384xbf16, #tpu.memory_space<vmem>>, vector<16x16xbf16>,
    %c0_119 = arith.constant 0 : index
    %c51 = arith.constant 51 : index
    %c0_120 = arith.constant 0 : index
    %105 = vector.load %arg2[%c0_119, %c51, %c0_120] : memref<1x80x16xbf16, #tpu.memory_space<vmem>>, vector<1x16x16xbf16>
    %106 = vector.shape_cast %105 : vector<1x16x16xbf16> to vector<16x16xbf16>
    %c16_121 = arith.constant 16 : index
    %c176_122 = arith.constant 176 : index
    %107 = vector.load %arg5[%c16_121, %c176_122] : memref<32x384xbf16, #tpu.memory_space<vmem>>, vector<16x16xbf16>
    tpu.vector_store %arg5[%c16_121, %c176_122], %106 {strides = array<i32>} : memref<32x384xbf16, #tpu.memory_space<vmem>>, vector<16x16xbf16>,
    %c0_123 = arith.constant 0 : index
    %c52 = arith.constant 52 : index
    %c0_124 = arith.constant 0 : index
    %108 = vector.load %arg2[%c0_123, %c52, %c0_124] : memref<1x80x16xbf16, #tpu.memory_space<vmem>>, vector<1x16x16xbf16>
    %109 = vector.shape_cast %108 : vector<1x16x16xbf16> to vector<16x16xbf16>
    %c16_125 = arith.constant 16 : index
    %c192_126 = arith.constant 192 : index
    %110 = vector.load %arg5[%c16_125, %c192_126] : memref<32x384xbf16, #tpu.memory_space<vmem>>, vector<16x16xbf16>
    tpu.vector_store %arg5[%c16_125, %c192_126], %109 {strides = array<i32>} : memref<32x384xbf16, #tpu.memory_space<vmem>>, vector<16x16xbf16>,
    %c0_127 = arith.constant 0 : index
    %c53 = arith.constant 53 : index
    %c0_128 = arith.constant 0 : index
    %111 = vector.load %arg2[%c0_127, %c53, %c0_128] : memref<1x80x16xbf16, #tpu.memory_space<vmem>>, vector<1x16x16xbf16>
    %112 = vector.shape_cast %111 : vector<1x16x16xbf16> to vector<16x16xbf16>
    %c16_129 = arith.constant 16 : index
    %c208_130 = arith.constant 208 : index
    %113 = vector.load %arg5[%c16_129, %c208_130] : memref<32x384xbf16, #tpu.memory_space<vmem>>, vector<16x16xbf16>
    tpu.vector_store %arg5[%c16_129, %c208_130], %112 {strides = array<i32>} : memref<32x384xbf16, #tpu.memory_space<vmem>>, vector<16x16xbf16>,
    %c0_131 = arith.constant 0 : index
    %c54 = arith.constant 54 : index
    %c0_132 = arith.constant 0 : index
    %114 = vector.load %arg2[%c0_131, %c54, %c0_132] : memref<1x80x16xbf16, #tpu.memory_space<vmem>>, vector<1x16x16xbf16>
    %115 = vector.shape_cast %114 : vector<1x16x16xbf16> to vector<16x16xbf16>
    %c16_133 = arith.constant 16 : index
    %c224_134 = arith.constant 224 : index
    %116 = vector.load %arg5[%c16_133, %c224_134] : memref<32x384xbf16, #tpu.memory_space<vmem>>, vector<16x16xbf16>
    tpu.vector_store %arg5[%c16_133, %c224_134], %115 {strides = array<i32>} : memref<32x384xbf16, #tpu.memory_space<vmem>>, vector<16x16xbf16>,
    %c0_135 = arith.constant 0 : index
    %c55 = arith.constant 55 : index
    %c0_136 = arith.constant 0 : index
    %117 = vector.load %arg2[%c0_135, %c55, %c0_136] : memref<1x80x16xbf16, #tpu.memory_space<vmem>>, vector<1x16x16xbf16>
    %118 = vector.shape_cast %117 : vector<1x16x16xbf16> to vector<16x16xbf16>
    %c16_137 = arith.constant 16 : index
    %c240_138 = arith.constant 240 : index
    %119 = vector.load %arg5[%c16_137, %c240_138] : memref<32x384xbf16, #tpu.memory_space<vmem>>, vector<16x16xbf16>
    tpu.vector_store %arg5[%c16_137, %c240_138], %118 {strides = array<i32>} : memref<32x384xbf16, #tpu.memory_space<vmem>>, vector<16x16xbf16>,
    %c0_139 = arith.constant 0 : index
    %c56 = arith.constant 56 : index
    %c0_140 = arith.constant 0 : index
    %120 = vector.load %arg2[%c0_139, %c56, %c0_140] : memref<1x80x16xbf16, #tpu.memory_space<vmem>>, vector<1x16x16xbf16>
    %121 = vector.shape_cast %120 : vector<1x16x16xbf16> to vector<16x16xbf16>
    %c16_141 = arith.constant 16 : index
    %c256_142 = arith.constant 256 : index
    %122 = vector.load %arg5[%c16_141, %c256_142] : memref<32x384xbf16, #tpu.memory_space<vmem>>, vector<16x16xbf16>
    tpu.vector_store %arg5[%c16_141, %c256_142], %121 {strides = array<i32>} : memref<32x384xbf16, #tpu.memory_space<vmem>>, vector<16x16xbf16>,
    %c0_143 = arith.constant 0 : index
    %c57 = arith.constant 57 : index
    %c0_144 = arith.constant 0 : index
    %123 = vector.load %arg2[%c0_143, %c57, %c0_144] : memref<1x80x16xbf16, #tpu.memory_space<vmem>>, vector<1x16x16xbf16>
    %124 = vector.shape_cast %123 : vector<1x16x16xbf16> to vector<16x16xbf16>
    %c16_145 = arith.constant 16 : index
    %c272_146 = arith.constant 272 : index
    %125 = vector.load %arg5[%c16_145, %c272_146] : memref<32x384xbf16, #tpu.memory_space<vmem>>, vector<16x16xbf16>
    tpu.vector_store %arg5[%c16_145, %c272_146], %124 {strides = array<i32>} : memref<32x384xbf16, #tpu.memory_space<vmem>>, vector<16x16xbf16>,
    %c0_147 = arith.constant 0 : index
    %c58 = arith.constant 58 : index
    %c0_148 = arith.constant 0 : index
    %126 = vector.load %arg2[%c0_147, %c58, %c0_148] : memref<1x80x16xbf16, #tpu.memory_space<vmem>>, vector<1x16x16xbf16>
    %127 = vector.shape_cast %126 : vector<1x16x16xbf16> to vector<16x16xbf16>
    %c16_149 = arith.constant 16 : index
    %c288_150 = arith.constant 288 : index
    %128 = vector.load %arg5[%c16_149, %c288_150] : memref<32x384xbf16, #tpu.memory_space<vmem>>, vector<16x16xbf16>
    tpu.vector_store %arg5[%c16_149, %c288_150], %127 {strides = array<i32>} : memref<32x384xbf16, #tpu.memory_space<vmem>>, vector<16x16xbf16>,
    %c0_151 = arith.constant 0 : index
    %c59 = arith.constant 59 : index
    %c0_152 = arith.constant 0 : index
    %129 = vector.load %arg2[%c0_151, %c59, %c0_152] : memref<1x80x16xbf16, #tpu.memory_space<vmem>>, vector<1x16x16xbf16>
    %130 = vector.shape_cast %129 : vector<1x16x16xbf16> to vector<16x16xbf16>
    %c16_153 = arith.constant 16 : index
    %c304_154 = arith.constant 304 : index
    %131 = vector.load %arg5[%c16_153, %c304_154] : memref<32x384xbf16, #tpu.memory_space<vmem>>, vector<16x16xbf16>
    tpu.vector_store %arg5[%c16_153, %c304_154], %130 {strides = array<i32>} : memref<32x384xbf16, #tpu.memory_space<vmem>>, vector<16x16xbf16>,
    %c0_155 = arith.constant 0 : index
    %c60 = arith.constant 60 : index
    %c0_156 = arith.constant 0 : index
    %132 = vector.load %arg2[%c0_155, %c60, %c0_156] : memref<1x80x16xbf16, #tpu.memory_space<vmem>>, vector<1x16x16xbf16>
    %133 = vector.shape_cast %132 : vector<1x16x16xbf16> to vector<16x16xbf16>
    %c16_157 = arith.constant 16 : index
    %c320_158 = arith.constant 320 : index
    %134 = vector.load %arg5[%c16_157, %c320_158] : memref<32x384xbf16, #tpu.memory_space<vmem>>, vector<16x16xbf16>
    tpu.vector_store %arg5[%c16_157, %c320_158], %133 {strides = array<i32>} : memref<32x384xbf16, #tpu.memory_space<vmem>>, vector<16x16xbf16>,
    %c0_159 = arith.constant 0 : index
    %c61 = arith.constant 61 : index
    %c0_160 = arith.constant 0 : index
    %135 = vector.load %arg2[%c0_159, %c61, %c0_160] : memref<1x80x16xbf16, #tpu.memory_space<vmem>>, vector<1x16x16xbf16>
    %136 = vector.shape_cast %135 : vector<1x16x16xbf16> to vector<16x16xbf16>
    %c16_161 = arith.constant 16 : index
    %c336_162 = arith.constant 336 : index
    %137 = vector.load %arg5[%c16_161, %c336_162] : memref<32x384xbf16, #tpu.memory_space<vmem>>, vector<16x16xbf16>
    tpu.vector_store %arg5[%c16_161, %c336_162], %136 {strides = array<i32>} : memref<32x384xbf16, #tpu.memory_space<vmem>>, vector<16x16xbf16>,
    %c0_163 = arith.constant 0 : index
    %c62 = arith.constant 62 : index
    %c0_164 = arith.constant 0 : index
    %138 = vector.load %arg2[%c0_163, %c62, %c0_164] : memref<1x80x16xbf16, #tpu.memory_space<vmem>>, vector<1x16x16xbf16>
    %139 = vector.shape_cast %138 : vector<1x16x16xbf16> to vector<16x16xbf16>
    %c16_165 = arith.constant 16 : index
    %c352_166 = arith.constant 352 : index
    %140 = vector.load %arg5[%c16_165, %c352_166] : memref<32x384xbf16, #tpu.memory_space<vmem>>, vector<16x16xbf16>
    tpu.vector_store %arg5[%c16_165, %c352_166], %139 {strides = array<i32>} : memref<32x384xbf16, #tpu.memory_space<vmem>>, vector<16x16xbf16>,
    %c0_167 = arith.constant 0 : index
    %c63 = arith.constant 63 : index
    %c0_168 = arith.constant 0 : index
    %141 = vector.load %arg2[%c0_167, %c63, %c0_168] : memref<1x80x16xbf16, #tpu.memory_space<vmem>>, vector<1x16x16xbf16>
    %142 = vector.shape_cast %141 : vector<1x16x16xbf16> to vector<16x16xbf16>
    %c16_169 = arith.constant 16 : index
    %c368_170 = arith.constant 368 : index
    %143 = vector.load %arg5[%c16_169, %c368_170] : memref<32x384xbf16, #tpu.memory_space<vmem>>, vector<16x16xbf16>
    tpu.vector_store %arg5[%c16_169, %c368_170], %142 {strides = array<i32>} : memref<32x384xbf16, #tpu.memory_space<vmem>>, vector<16x16xbf16>,
    %c0_171 = arith.constant 0 : index
    %c0_172 = arith.constant 0 : index
    %144 = vector.load %arg5[%c0_171, %c0_172] : memref<32x384xbf16, #tpu.memory_space<vmem>>, vector<32x384xbf16>
    %c0_173 = arith.constant 0 : index
    %c0_174 = arith.constant 0 : index
    %c0_175 = arith.constant 0 : index
    %145 = vector.load %arg3[%c0_173, %c0_174, %c0_175] : memref<1x384x128xbf16, #tpu.memory_space<vmem>>, vector<1x384x128xbf16>
    %146 = vector.shape_cast %145 : vector<1x384x128xbf16> to vector<384x128xbf16>
    %cst = arith.constant dense<0.000000e+00> : vector<32x128xf32>
    %147 = tpu.matmul %144, %146, %cst {dimension_numbers = #tpu.dot_dimension_numbers<[1], [0], [0], [1], [0, 0, 1, 1], [], []>} : vector<32x384xbf16>, vector<384x128xbf16>, vector<32x128xf32> -> vector<32x128xf32>
    %c0_176 = arith.constant 0 : index
    %c0_177 = arith.constant 0 : index
    %c0_178 = arith.constant 0 : index
    %148 = vector.load %arg4[%c0_176, %c0_177, %c0_178] : memref<1x32x128xf32, #tpu.memory_space<vmem>>, vector<1x32x128xf32>
    %149 = vector.shape_cast %148 : vector<1x32x128xf32> to vector<32x128xf32>
    %150 = vector.shape_cast %147 : vector<32x128xf32> to vector<1x32x128xf32>
    tpu.vector_store %arg4[%c0_176, %c0_177, %c0_178], %150 {strides = array<i32>} : memref<1x32x128xf32, #tpu.memory_space<vmem>>, vector<1x32x128xf32>,
    return
  }
  func.func @transform_0(%arg0: i32, %arg1: i32) -> (i32, i32, i32) {
    %c0_i32 = arith.constant 0 : i32
    %c0_i32_0 = arith.constant 0 : i32
    return %arg0, %arg1, %c0_i32 : i32, i32, i32
  }
  func.func @transform_1(%arg0: i32, %arg1: i32) -> (i32, i32, i32) {
    %c0_i32 = arith.constant 0 : i32
    %c0_i32_0 = arith.constant 0 : i32
    %c0_i32_1 = arith.constant 0 : i32
    return %arg0, %c0_i32, %c0_i32_0 : i32, i32, i32
  }
  func.func @transform_2(%arg0: i32, %arg1: i32) -> (i32, i32, i32) {
    %c0_i32 = arith.constant 0 : i32
    %c0_i32_0 = arith.constant 0 : i32
    return %arg0, %arg1, %c0_i32 : i32, i32, i32
  }
}

</mosaic_0001>

<bundles_post_ra>
// kernel: tpu_custom_call.1
= control target key start
LH: loop header
LB: loop body
LE: loop exit
PB: predicated region body
PF: predicated region fallthrough
CT: control target
= control target key end

     0   :  { %7 = vsyncpa [#allocation4], 0  ;;  %s3229_s0 = inlined_call_operand.vmem [shape: bf16[2,160,16], index: 0, kind: input, shape index: {}]   ;;  %s3230_s1 = inlined_call_operand.hbm [shape: bf16[2,384,128], index: 1, kind: input, shape index: {}]   ;;  %s3231_s2 = inlined_call_operand.hbm [shape: f32[2,64,128], index: 2, kind: output, shape index: {}]  }
   0x1   :  { %9 = vsyncpa [#allocation4 + $0x1], 0 }
   0x2   :  { %10 = vsyncpa [#allocation5], 0 }
   0x3   :  { %12 = vsyncpa [#allocation5 + $0x1], 0  ;;  %s2431_s9 = smov 0   ;;  %s2433_s10 = smov 0  }
   0x4   :  { %s2435_s11 = smov 0   ;;  %s2437_s12 = smov 0  }
   0x5   :  { %s2439_s13 = smov 0   ;;  %s2441_s14 = smov 0  }
   0x6   :  { %s2443_s15 = smov 0   ;;  %s2445_s16 = smov 0  }
   0x7   :  { %s2447_s17 = smov 0   ;;  %s2449_s18 = smov 0  }
   0x8   :  { %s2451_s19 = smov 0  }
   0x9 LB: > { %3236 = sst [smem:[#allocation9_spill]] %s2395_s17  ;;  %s1938_s20 = sadd.s32 4294967295, %s2403_s19   ;;  %s2403_s19 = sphi %s2451_s19, %s18_s19   ;;  %s2399_s18 = sphi %s2449_s18, %s3261_s18   ;;  %s2395_s17 = sphi %s2447_s17, %s3260_s17   ;;  %s2391_s16 = sphi %s2445_s16, %s3259_s16   ;;  %s2387_s15 = sphi %s2443_s15, %s3258_s15   ;;  %s2383_s14 = sphi %s2441_s14, %s3267_s14   ;;  %s2379_s13 = sphi %s2439_s13, %s3266_s13   ;;  %s2375_s12 = sphi %s2437_s12, %s3265_s12   ;;  %s2371_s11 = sphi %s2435_s11, %s3264_s11   ;;  %s2367_s10 = sphi %s2433_s10, %s3263_s10   ;;  %s2363_s9 = sphi %s2431_s9, %s3262_s9  }
   0xa   : > { %3237 = sst [smem:[#allocation10_spill]] %s2399_s18  ;;  %s1939_s21 = sadd.s32 4294967294, %s2403_s19  }
   0xb   : > { %s27_s22 = sadd.s32 1, %s2395_s17  ;;  %s30_s23 = sadd.s32 1, %s2399_s18 }
   0xc   : > { %p28_p0 = scmp.ge.s32.totalorder %s27_s22, 2  ;;  %s65_s24 = sadd.s32 1, %s2383_s14 }
   0xd   : > { %p72_p1 = scmp.ne.s32.totalorder %s2383_s14, %s2379_s13  ;;  %p73_p2 = scmp.eq.s32.totalorder %s2403_s19, 0 }
   0xe   : > { %s3269_s22 = smov (%p28_p0, %s27_s22), 0  ;;  %s3271_s23 = smov (!%p28_p0, %s30_s23), %s2399_s18 }
   0xf   : > { %3238 = sst [smem:[#allocation11_spill]] %s3269_s22  ;;  %p2495_p3 = por %p73_p2, %p72_p1 }
  0x10   : > { %p78_p4 = scmp.ne.s32.totalorder %s2379_s13, %s2375_s12  ;;  %p32_p5 = scmp.ge.s32.totalorder %s3271_s23, 2 }
  0x11   : > { %p79_p6 = scmp.eq.s32.totalorder %s1938_s20, 0  ;;  %s89_s26 = ssub.s32 %s2395_s17, %s3269_s22 }
  0x12   : > { %s93_s27 = sadd.s32 1, %s2371_s11  ;;  %s3273_s23 = smov (%p32_p5, %s3271_s23), 0 }
  0x13   : > { %3240 = sst [smem:[#allocation12_spill]] %s3273_s23  ;;  %p2505_p7 = por %p79_p6, %p78_p4 }
  0x14   : > { %p103_p8 = scmp.ne.s32.totalorder %s2371_s11, %s2367_s10  ;;  %s62_s29 = ssub.s32 %s2399_s18, %s3273_s23 }
  0x15   : > { %p104_p9 = scmp.eq.s32.totalorder %s1938_s20, 3  ;;  %p63_p10 = scmp.eq.s32.totalorder %s62_s29, 0 }
  0x16   : > { %s90_s30 = sor.u32 %s89_s26, %s62_s29  ;;  %p109_p13 = scmp.ne.s32.totalorder %s2367_s10, %s2363_s9 }
  0x17   : > { %p91_p11 = scmp.eq.s32.totalorder %s90_s30, 0  ;;  %p2513_p12 = por %p104_p9, %p103_p8 }
  0x18   : > { %s2518_s4 = scalar_select %p63_p10, %s2383_s14, %s65_s24  }
  0x19   : > { %s2521_s5 = scalar_select %p91_p11, %s2371_s11, %s93_s27  }
  0x1a   : > { %p110_p0 = scmp.eq.s32.totalorder %s1939_s21, 3  ;;  %p2150_p1 = scmp.lt.s32.totalorder %s2403_s19, 4 }
  0x1b   : > { %s143_s7 = sand.u32 1, %s2383_s14   ;;  %s2135_s12 = smul.u32 192, %s2399_s18 }
  0x1c   : > { %p2526_p2 = por %p110_p0, %p109_p13  ;;  %s2134_s8 = smul.u32 192, %s143_s7 }
  0x1d   : > { %p2143_p4 = pnand %p2150_p1, %p2495_p3  ;;  %s152_s24 = scalar_lea.hbm %s3230_s1, %s2135_s12 }
  0x1e   : > { %s147_s29 = scalar_lea.vmem [#allocation3], %s2134_s8  ;;  %s153_s30 = sshll.u32 %s152_s24, 4  ;;  %s154_s30 = int_to_ptr.hbm [resolvable:$true] %s153_s30 }
  0x1f   : > { %s155_s27 = sshll.u32 %s147_s29, 4  ;;  %p1943_p5 = scmp.ge.s32.totalorder %s2403_s19, 1  ;;  %s156_s27 = int_to_ptr.vmem [resolvable:$true] %s155_s27 }
  0x20   : > { %s144_s21 = scalar_lea.sflag [#allocation4], %s143_s7  ;;  %s2405_s23 = smov 64  }
  0x21   : > { %s2406_s22 = smov 4   ;;  %p163_p6 = scmp.lt.s32.totalorder %s2403_s19, 5 }
  0x22   : > { %2145 = dma.hbm_to_vmem [thread:$0]  (!%p2143_p4), %s154_s30, 3072, %s156_s27, %s144_s21, %s2405_s23, %s2405_s23, %s2406_s22  }
  0x23   : > { %p164_p8 = pnand %p1943_p5, %p163_p6 }
  0x24   : > { %s169_s25 = sand.u32 (!%p164_p8), 1, %s2379_s13  }
  0x25   : > { %167 = sbr.rel (%p164_p8) target bundleno = 540 (0x21c), region = 28  ;;  %s170_s17 = scalar_lea.sflag (!%p164_p8), [#allocation4], %s169_s25 }
  0x26   : > { %s2136_s18 = smul.u32 (!%p164_p8), 192, %s169_s25 }
  0x28   : > { %s2540_s20 = scalar_lea.vmem (!%p164_p8), [#allocation3], %s2136_s18 }
  0x2a   : > { %2354 = dma.done.wait (%p2505_p7), %s170_s17, 3072  }
  0x2b   : > { %2356 = vsyncadd (%p2505_p7), %s170_s17, 4294964224  ;;  %s204_s7 = smul.u32 10, %s2387_s15  ;;  %p205_p3 = scmp.lt.s32.totalorder %s2391_s16, 1  ;;  %vm333_vm0 = vcmask 1041408   ;;  %vm334_vm1 = vcmask 1045508   ;;  %vm265_vm2 = vcmask 1042432  }
  0x2c   : > { %vm266_vm3 = vcmask 1046532   ;;  %vm2554_vm4 = vmor %vm333_vm0, %vm334_vm1  ;;  %vm223_vm6 = vsmask.f32 3328  ;;  %s2407_s17 = smov 64   ;;  %vm224_vm7 = vsmask.f32 7440 }
  0x2d   : > { %s206_s22 = scalar_select %p205_p3, %s2391_s16, 1  ;;  %vm2565_vm5 = vmor %vm265_vm2, %vm266_vm3  ;;  %vm287_vm8 = vsmask.f32 2304  ;;  %vm288_vm9 = vsmask.f32 6416  ;;  %vm401_vm14 = vcmask 1040384  }
  0x2e   : > { %p207_p9 = scmp.lt.s32.totalorder %s204_s7, 19  ;;  %s2408_s24 = smov 32   ;;  %vm2585_vm10 = vmor %vm223_vm6, %vm224_vm7  ;;  %vm355_vm12 = vsmask.f32 1280  ;;  %vm356_vm13 = vsmask.f32 5392 }
  0x2f   : > { %s2137_s23 = smul.u32 20, %s206_s22  ;;  %s2409_s29 = smov 16   ;;  %vm2600_vm11 = vmor %vm287_vm8, %vm288_vm9  ;;  %vm402_vm15 = vcmask 1044484   ;;  %vm423_vm2 = vsmask.f32 256  ;;  %vm217_vm7 = vcmask 125952  }
  0x30   : > { %s3275_s7 = smov (!%p207_p9, %s204_s7), 19  ;;  %s2410_s27 = smov 48   ;;  %vm2623_vm0 = vmor %vm355_vm12, %vm356_vm13  ;;  %vm424_vm3 = vsmask.f32 4368  ;;  %vm256_vm8 = vcmask 257152   ;;  %vm281_vm9 = vcmask 388352  }
  0x31   : > { %s210_s8 = sadd.s32 %s2137_s23, %s3275_s7  ;;  %vm2632_vm1 = vmor %vm401_vm14, %vm402_vm15  ;;  %s2411_s30 = smov 80   ;;  %vm324_vm12 = vcmask 519552   ;;  %vm349_vm13 = vcmask 650752   ;;  %vm392_vm14 = vcmask 781952   ;;  %vm417_vm15 = vcmask 913152  }
  0x32   : > { %s1945_s12 = sshll.u32 %s210_s8, 2  ;;  %s2412_s21 = smov 96   ;;  %vm2652_vm6 = vmor %vm423_vm2, %vm424_vm3  ;;  %vm454_vm2 = vcmask 1044352  }
  0x33   : > { %s2552_s28 = scalar_lea.vmem %s3229_s0, %s1945_s12  ;;  %s2413_s25 = smov 112  }
  0x34   : > { %v327_v1 = vld [vmem:[%s2552_s28] sm:$0xc]  ;;  %v2560_v2 = vld [vmem:[%s2552_s28 + $0x4] sm:$0xf]  ;;  %v261_v12 = vld [vmem:[%s2552_s28 + $0x8] sm:$0x1] }
  0x35   : > { %v259_v3 = vld [vmem:[%s2552_s28] sm:$0xe]  ;;  %v1947_v4 = vrot.slane %v327_v1, 10  ;;  %v338_v5 = vrot.slane %v2560_v2, 6  ;;  %v260_v6 = vld [vmem:[%s2552_s28 + $0x4] sm:$0xf] }
  0x36   : > { %v1946_v8 = vrot.slane %v259_v3, 9  ;;  %v270_v9 = vrot.slane %v260_v6, 5  ;;  %v220_v10 = vld [vmem:[%s2552_s28] sm:$0xf]  ;;  %v221_v13 = vld [vmem:[%s2552_s28 + $0x4] sm:$0xf] }
  0x37   : > { %v339_v11 = vsel %vm2554_vm4, %v1947_v4, %v338_v5  ;;  %v227_v14 = vshrl.u32 %v220_v10, 16  ;;  %v230_v15 = vshll.u32 %v220_v10, 16  ;;  %v236_v17 = vshll.u32 %v221_v13, 16  ;;  %v222_v21 = vld [vmem:[%s2552_s28 + $0x8] sm:$0x1]  ;;  %s2091_s7 = sshll.u32 %s2387_s15, 2 }
  0x38   : > { %343 = vrot.lane.b32.xlu0 %v339_v11, %s2407_s17  ;;  %v271_v16 = vsel %vm2565_vm5, %v1946_v8, %v270_v9  ;;  %v240_v18 = vshrl.u32 %v221_v13, 16  ;;  %v272_v22 = vrot.slane %v270_v9, 4  ;;  %v273_v23 = vrot.slane %v261_v12, 5  ;;  %v284_v26 = vld [vmem:[%s2552_s28] sm:$0xe]  ;;  %s2092_s22 = sshll.u32 %s2391_s16, 3 }
  0x39   : > { %275 = vrot.lane.b32.xlu1 %v271_v16, %s2408_s24  ;;  %v229_v19 = vrot.slane %v227_v14, 4  ;;  %v232_v20 = vrot.slane %v230_v15, 5  ;;  %v238_v24 = vrot.slane %v236_v17, 5  ;;  %v285_v28 = vld [vmem:[%s2552_s28 + $0x4] sm:$0xf]  ;;  %v291_v29 = vshrl.u32 %v284_v26, 16  ;;  %s1827_s8 = sadd.s32 %s2092_s22, %s2091_s7 }
  0x3a   : > { %v242_v25 = vrot.slane %v240_v18, 4  ;;  %v294_v30 = vshll.u32 %v284_v26, 16  ;;  %v246_v33 = vshll.u32 %v222_v21, 16  ;;  %v300_v34 = vshrl.u32 %v285_v28, 16  ;;  %v353_v39 = vld [vmem:[%s2552_s28 + $0x4] sm:$0xf] }
  0x3b   : > { %v233_v27 = vor.u32 %v232_v20, %v229_v19  ;;  %v303_v35 = vshll.u32 %v285_v28, 16  ;;  %v293_v37 = vrot.slane %v291_v29, 5  ;;  %v274_v40 = vsel %vm2565_vm5, %v272_v22, %v273_v23  ;;  %v354_v43 = vld [vmem:[%s2552_s28 + $0x8] sm:$0x7]  ;;  %v352_v10 = vld [vmem:[%s2552_s28] sm:$0xc] }
  0x3c   : > { %v243_v32 = vor.u32 %v242_v25, %v238_v24  ;;  %v296_v38 = vrot.slane %v294_v30, 6  ;;  %v302_v41 = vrot.slane %v300_v34, 5  ;;  %v329_v45 = vld [vmem:[%s2552_s28 + $0x8] sm:$0x3]  ;;  %v368_v47 = vshrl.u32 %v353_v39, 16  ;;  %s2093_s12 = sshll.u32 %s1827_s8, 3 }
  0x3d   : > { %v234_v36 = vrot.slane %v233_v27, 4  ;;  %v305_v42 = vrot.slane %v303_v35, 6  ;;  %v371_v48 = vshll.u32 %v353_v39, 16  ;;  %v286_v49 = vld [vmem:[%s2552_s28 + $0x8] sm:$0x3]  ;;  %v248_v51 = vrot.slane %v246_v33, 5 }
  0x3e   : > { %v297_v46 = vor.u32 %v296_v38, %v293_v37  ;;  %v244_v50 = vrot.slane %v243_v32, 4  ;;  %v378_v54 = vshrl.u32 %v354_v43, 16  ;;  %v370_v56 = vrot.slane %v368_v47, 6  ;;  %v674_v3 = vld [vmem:[%s2552_s28 + $0x8] sm:$0xf] }
  0x3f   : > { %v239_v44 = vsel %vm2585_vm10, %v234_v36, %v238_v24  ;;  %v306_v53 = vor.u32 %v305_v42, %v302_v41  ;;  %v373_v57 = vrot.slane %v371_v48, 7  ;;  %v381_v58 = vshll.u32 %v354_v43, 16  ;;  %v395_v12 = vld [vmem:[%s2552_s28] sm:$0x8]  ;;  %v421_v16 = vld [vmem:[%s2552_s28 + $0x4] sm:$0xf] }
  0x40   : > { %250 = vrot.lane.b32.xlu0 %v239_v44, %s2409_s29  ;;  %v298_v55 = vrot.slane %v297_v46, 4  ;;  %v340_v59 = vrot.slane %v338_v5, 4  ;;  %v341_v60 = vrot.slane %v329_v45, 6  ;;  %v310_v61 = vshrl.u32 %v286_v49, 16  ;;  %v396_v17 = vld [vmem:[%s2552_s28 + $0x4] sm:$0xf] }
  0x41   : > { %277 = vrot.lane.b32.xlu1 %v274_v40, %s2408_s24  ;;  %v313_v62 = vshll.u32 %v286_v49, 16  ;;  %v380_v1 = vrot.slane %v378_v54, 6  ;;  %v374_v4 = vor.u32 %v373_v57, %v370_v56  ;;  %v383_v6 = vrot.slane %v381_v58, 7  ;;  %v420_v29 = vld [vmem:[%s2552_s28] sm:$0x8] }
  0x42   : > { %v307_v63 = vsel %vm2600_vm11, %v298_v55, %v306_v53  ;;  %v312_v2 = vrot.slane %v310_v61, 5  ;;  %v249_v8 = vsel %vm2585_vm10, %v244_v50, %v248_v51  ;;  %v308_v9 = vrot.slane %v306_v53, 4  ;;  %v675_v33 = vld [vmem:[%s2552_s28 + $0xc] sm:$0xf]  ;;  %v397_v48 = vld [vmem:[%s2552_s28 + $0x8] sm:$0x7] }
  0x43   : > { %318 = vrot.lane.b32.xlu2 %v307_v63, %s2410_s27  ;;  %v315_v5 = vrot.slane %v313_v62, 6  ;;  %v342_v11 = vsel %vm2554_vm4, %v340_v59, %v341_v60  ;;  %v678_v14 = vshrl.u32 %v674_v3, 16  ;;  %v681_v15 = vshll.u32 %v674_v3, 16  ;;  %v731_v49 = vld [vmem:[%s2552_s28 + $0xc] sm:$0xf] }
  0x44   : > { %v376_v18 = vrot.slane %v374_v4, 4  ;;  %v384_v19 = vor.u32 %v383_v6, %v380_v1  ;;  %v359_v20 = vshrl.u32 %v352_v10, 16  ;;  %v1948_v21 = vrot.slane %v395_v12, 11  ;;  %v710_v54 = vld [vmem:[%s2552_s28 + $0xc] sm:$0xf] }
  0x45   : > { %v316_v13 = vor.u32 %v315_v5, %v312_v2  ;;  %v432_v24 = vshrl.u32 %v421_v16, 16  ;;  %v362_v25 = vshll.u32 %v352_v10, 16  ;;  %v406_v26 = vrot.slane %v396_v17, 7  ;;  %v709_v55 = vld [vmem:[%s2552_s28 + $0x8] sm:$0xe] }
  0x46   : > { %v680_v27 = vrot.slane %v678_v14, 4  ;;  %v683_v28 = vrot.slane %v681_v15, 5  ;;  %v361_v30 = vrot.slane %v359_v20, 6  ;;  %v385_v35 = vsel %vm2623_vm0, %v376_v18, %v384_v19  ;;  %v732_v58 = vld [vmem:[%s2552_s28 + $0x10] sm:$0x3] }
  0x47   : > { %v317_v23 = vsel %vm2600_vm11, %v308_v9, %v316_v13  ;;  %v364_v34 = vrot.slane %v362_v25, 7  ;;  %v427_v36 = vshrl.u32 %v420_v29, 16  ;;  %v2640_v37 = vrot.slane %v432_v24, 7  ;;  %v676_v3 = vld [vmem:[%s2552_s28 + $0x10] sm:$0x1] }
  0x48   : > { %252 = vrot.lane.b32.xlu0 %v249_v8, %s2409_s29  ;;  %v435_v38 = vshll.u32 %v421_v16, 16  ;;  %v407_v40 = vsel %vm2632_vm1, %v1948_v21, %v406_v26  ;;  %v684_v41 = vor.u32 %v683_v28, %v680_v27  ;;  %v687_v42 = vshll.u32 %v675_v33, 16  ;;  %v711_v6 = vld [vmem:[%s2552_s28 + $0x10] sm:$0x1]  ;;  %v461_v14 = vld [vmem:[%s2552_s28 + $0x4] sm:$0xf] }
  0x49   : > { %345 = vrot.lane.b32.xlu1 %v342_v11, %s2407_s17  ;;  %v365_v39 = vor.u32 %v364_v34, %v361_v30  ;;  %v691_v44 = vshrl.u32 %v675_v33, 16  ;;  %v1949_v45 = vrot.slane %v427_v36, 11  ;;  %v408_v56 = vrot.slane %v406_v26, 4  ;;  %v462_v21 = vld [vmem:[%s2552_s28 + $0x8] sm:$0xf] }
  0x4a   : > { %v437_v46 = vor.u32 %v435_v38, %v2640_v37  ;;  %v685_v50 = vrot.slane %v684_v41, 4  ;;  %v689_v51 = vrot.slane %v687_v42, 5  ;;  %v409_v57 = vrot.slane %v397_v48, 7  ;;  %v769_v36 = vld [vmem:[%s2552_s28 + $0x8] sm:$0xc] }
  0x4b   : > { %320 = vrot.lane.b32.xlu2 %v317_v23, %s2410_s27  ;;  %v366_v43 = vrot.slane %v365_v39, 4  ;;  %v743_v59 = vshrl.u32 %v731_v49, 16  ;;  %v746_v60 = vshll.u32 %v731_v49, 16  ;;  %v693_v62 = vrot.slane %v691_v44, 4  ;;  %v770_v38 = vld [vmem:[%s2552_s28 + $0xc] sm:$0xf] }
  0x4c   : > { %v438_v61 = vsel %vm2652_vm6, %v1949_v45, %v437_v46  ;;  %v690_v63 = vsel %vm2585_vm10, %v685_v50, %v689_v51  ;;  %v717_v1 = vrot.slane %v710_v54, 5  ;;  %v1954_v2 = vrot.slane %v709_v55, 9  ;;  %v791_v45 = vld [vmem:[%s2552_s28 + $0xc] sm:$0xf] }
  0x4d   : > { %v375_v47 = vsel %vm2623_vm0, %v366_v43, %v374_v4  ;;  %v730_v4 = vld [vmem:[%s2552_s28 + $0x8] sm:$0xe]  ;;  %v753_v5 = vshrl.u32 %v732_v58, 16  ;;  %v410_v8 = vsel %vm2632_vm1, %v408_v56, %v409_v57  ;;  %v745_v9 = vrot.slane %v743_v59, 5  ;;  %v463_v50 = vld [vmem:[%s2552_s28 + $0xc] sm:$0x1] }
  0x4e   : > { %v748_v10 = vrot.slane %v746_v60, 6  ;;  %v756_v11 = vshll.u32 %v732_v58, 16  ;;  %v694_v12 = vor.u32 %v693_v62, %v689_v51  ;;  %v697_v13 = vshll.u32 %v676_v3, 16  ;;  %v792_v57 = vld [vmem:[%s2552_s28 + $0x10] sm:$0x7] }
  0x4f   : > { %v734_v15 = vshrl.u32 %v730_v4, 16  ;;  %v737_v16 = vshll.u32 %v730_v4, 16  ;;  %v719_v17 = vrot.slane %v717_v1, 4  ;;  %v720_v18 = vrot.slane %v711_v6, 5  ;;  %v790_v62 = vld [vmem:[%s2552_s28 + $0x8] sm:$0xc] }
  0x50   : > { %388 = vrot.lane.b32.xlu0 %v385_v35, %s2411_s30  ;;  %v718_v19 = vsel %vm2565_vm5, %v1954_v2, %v717_v1  ;;  %v755_v20 = vrot.slane %v753_v5, 5  ;;  %v749_v23 = vor.u32 %v748_v10, %v745_v9  ;;  %v758_v24 = vrot.slane %v756_v11, 6  ;;  %v771_v5 = vld [vmem:[%s2552_s28 + $0x10] sm:$0x3] }
  0x51   : > { %411 = vrot.lane.b32.xlu1 %v407_v40, %s2412_s21  ;;  %v465_v25 = vshrl.u32 %v461_v14, 16  ;;  %v468_v26 = vshll.u32 %v461_v14, 16  ;;  %v695_v27 = vrot.slane %v694_v12, 4  ;;  %v699_v28 = vrot.slane %v697_v13, 5 }
  0x52   : > { %v736_v29 = vrot.slane %v734_v15, 5  ;;  %v739_v30 = vrot.slane %v737_v16, 6  ;;  %v721_v33 = vsel %vm2565_vm5, %v719_v17, %v720_v18  ;;  %v474_v34 = vshll.u32 %v462_v21, 16 }
  0x53   : > { %386 = vrot.lane.b32.xlu2 %v375_v47, %s2411_s30  ;;  %v478_v35 = vshrl.u32 %v462_v21, 16  ;;  %v467_v39 = vrot.slane %v465_v25, 4  ;;  %v470_v40 = vrot.slane %v468_v26, 5  ;;  %v751_v41 = vrot.slane %v749_v23, 4  ;;  %v496_v21 = vld [vmem:[%s2552_s28 + $0x4] sm:$0xe] }
  0x54   : > { %v759_v42 = vor.u32 %v758_v24, %v755_v20  ;;  %v700_v43 = vsel %vm2585_vm10, %v695_v27, %v699_v28  ;;  %v740_v44 = vor.u32 %v739_v30, %v736_v29  ;;  %v1955_v46 = vrot.slane %v769_v36, 10  ;;  %v518_v28 = vld [vmem:[%s2552_s28 + $0x8] sm:$0xf] }
  0x55   : > { %v777_v47 = vrot.slane %v770_v38, 6  ;;  %v476_v48 = vrot.slane %v474_v34, 5  ;;  %v480_v49 = vrot.slane %v478_v35, 4  ;;  %v471_v51 = vor.u32 %v470_v40, %v467_v39  ;;  %v829_v34 = vld [vmem:[%s2552_s28 + $0x8] sm:$0x8] }
  0x56   : > { %v803_v54 = vshrl.u32 %v791_v45, 16  ;;  %v760_v55 = vsel %vm2600_vm11, %v751_v41, %v759_v42  ;;  %v741_v56 = vrot.slane %v740_v44, 4  ;;  %v806_v58 = vshll.u32 %v791_v45, 16  ;;  %v519_v39 = vld [vmem:[%s2552_s28 + $0xc] sm:$0x3] }
  0x57   : > { %v778_v59 = vsel %vm2554_vm4, %v1955_v46, %v777_v47  ;;  %v481_v60 = vor.u32 %v480_v49, %v476_v48  ;;  %v813_v3 = vshrl.u32 %v792_v57, 16  ;;  %v816_v4 = vshll.u32 %v792_v57, 16  ;;  %v517_v41 = vld [vmem:[%s2552_s28 + $0x4] sm:$0xe]  ;;  %v831_v44 = vld [vmem:[%s2552_s28 + $0x10] sm:$0x7] }
  0x58   : > { %448 = vrot.lane.b32.xlu0 %v438_v61, %s2413_s25  ;;  %v484_v61 = vshll.u32 %v463_v50, 16  ;;  %v805_v1 = vrot.slane %v803_v54, 6  ;;  %v750_v6 = vsel %vm2600_vm11, %v741_v56, %v749_v23  ;;  %v808_v2 = vrot.slane %v806_v58, 7  ;;  %v497_v23 = vld [vmem:[%s2552_s28 + $0x8] sm:$0xf] }
  0x59   : > { %701 = vrot.lane.b32.xlu1 %v690_v63, %s2409_s29  ;;  %v472_v63 = vrot.slane %v471_v51, 4  ;;  %v797_v9 = vshll.u32 %v790_v62, 16  ;;  %v482_v10 = vrot.slane %v481_v60, 4  ;;  %v815_v12 = vrot.slane %v813_v3, 6  ;;  %v851_v45 = vld [vmem:[%s2552_s28 + $0xc] sm:$0xf] }
  0x5a   : > { %v486_v11 = vrot.slane %v484_v61, 5  ;;  %v818_v13 = vrot.slane %v816_v4, 7  ;;  %v779_v14 = vrot.slane %v777_v47, 4  ;;  %v780_v15 = vrot.slane %v771_v5, 6  ;;  %v850_v60 = vld [vmem:[%s2552_s28 + $0x8] sm:$0x8] }
  0x5b   : > { %413 = vrot.lane.b32.xlu2 %v410_v8, %s2412_s21  ;;  %v794_v8 = vshrl.u32 %v790_v62, 16  ;;  %v477_v16 = vsel %vm2585_vm10, %v472_v63, %v476_v48  ;;  %v809_v17 = vor.u32 %v808_v2, %v805_v1  ;;  %v1950_v29 = vrot.slane %v496_v21, 9  ;;  %v556_v21 = vld [vmem:[%s2552_s28 + $0x4] sm:$0xc] }
  0x5c   : > { %v487_v20 = vsel %vm2585_vm10, %v482_v10, %v486_v11  ;;  %v819_v25 = vor.u32 %v818_v13, %v815_v12  ;;  %v781_v26 = vsel %vm2554_vm4, %v779_v14, %v780_v15  ;;  %v504_v30 = vrot.slane %v497_v23, 5  ;;  %v578_v12 = vld [vmem:[%s2552_s28 + $0x8] sm:$0xf] }
  0x5d   : > { %v796_v18 = vrot.slane %v794_v8, 6  ;;  %v811_v24 = vrot.slane %v809_v17, 4  ;;  %v530_v35 = vshrl.u32 %v518_v28, 16  ;;  %v533_v40 = vshll.u32 %v518_v28, 16 }
  0x5e   : > { %v505_v42 = vsel %vm2565_vm5, %v1950_v29, %v504_v30  ;;  %v1956_v46 = vrot.slane %v829_v34, 11  ;;  %v540_v47 = vshrl.u32 %v519_v39, 16  ;;  %v521_v48 = vshrl.u32 %v517_v41, 16 }
  0x5f   : > { %v820_v36 = vsel %vm2623_vm0, %v811_v24, %v819_v25  ;;  %v524_v49 = vshll.u32 %v517_v41, 16  ;;  %v532_v51 = vrot.slane %v530_v35, 5  ;;  %v535_v54 = vrot.slane %v533_v40, 6 }
  0x60   : > { %722 = vrot.lane.b32.xlu0 %v718_v19, %s2408_s24  ;;  %v799_v19 = vrot.slane %v797_v9, 7  ;;  %v840_v57 = vrot.slane %v831_v44, 7  ;;  %v859_v58 = vshrl.u32 %v851_v45, 16  ;;  %v542_v62 = vrot.slane %v540_v47, 5 }
  0x61   : > { %724 = vrot.lane.b32.xlu1 %v721_v33, %s2408_s24  ;;  %v830_v33 = vld [vmem:[%s2552_s28 + $0xc] sm:$0xf]  ;;  %v523_v63 = vrot.slane %v521_v48, 5  ;;  %v526_v1 = vrot.slane %v524_v49, 6  ;;  %v536_v3 = vor.u32 %v535_v54, %v532_v51  ;;  %v854_v8 = vshrl.u32 %v850_v60, 16 }
  0x62   : > { %v800_v27 = vor.u32 %v799_v19, %v796_v18  ;;  %v861_v9 = vrot.slane %v859_v58, 7  ;;  %v862_v10 = vshll.u32 %v851_v45, 16  ;;  %v852_v18 = vld [vmem:[%s2552_s28 + $0x10] sm:$0xf]  ;;  %v557_v19 = vld [vmem:[%s2552_s28 + $0x8] sm:$0xf] }
  0x63   : > { %703 = vrot.lane.b32.xlu2 %v700_v43, %s2409_s29  ;;  %v837_v43 = vrot.slane %v830_v33, 7  ;;  %v527_v11 = vor.u32 %v526_v1, %v523_v63  ;;  %v538_v13 = vrot.slane %v536_v3, 4  ;;  %v593_v24 = vshll.u32 %v578_v12, 16  ;;  %v558_v33 = vld [vmem:[%s2552_s28 + $0xc] sm:$0x3] }
  0x64   : > { %v801_v38 = vrot.slane %v800_v27, 4  ;;  %v868_v27 = vshrl.u32 %v852_v18, 16  ;;  %v564_v29 = vrot.slane %v557_v19, 6  ;;  %v1951_v34 = vrot.slane %v556_v21, 10  ;;  %v638_v51 = vld [vmem:[%s2552_s28 + $0x8] sm:$0xf] }
  0x65   : > { %v839_v56 = vrot.slane %v837_v43, 4  ;;  %v838_v61 = vsel %vm2632_vm1, %v1956_v46, %v837_v43  ;;  %v528_v23 = vrot.slane %v527_v11, 4  ;;  %v567_v46 = vrot.slane %v558_v33, 6  ;;  %v617_v60 = vld [vmem:[%s2552_s28 + $0x8] sm:$0xf] }
  0x66   : > { %v810_v50 = vsel %vm2623_vm0, %v801_v38, %v809_v17  ;;  %v864_v17 = vor.u32 %v862_v10, %v861_v9  ;;  %v595_v38 = vrot.slane %v593_v24, 7  ;;  %v870_v41 = vrot.slane %v868_v27, 7  ;;  %v637_v63 = vld [vmem:[%s2552_s28 + $0x4] sm:$0x8]  ;;  %v215_v10 = vld [vmem:[%s2552_s28] sm:$0xf] }
  0x67   : > { %v841_v5 = vsel %vm2632_vm1, %v839_v56, %v840_v57  ;;  %v566_v45 = vrot.slane %v564_v29, 4  ;;  %v565_v47 = vsel %vm2554_vm4, %v1951_v34, %v564_v29  ;;  %v866_v54 = vrot.slane %v861_v9, 4  ;;  %218 = vst.msk [vmem:[#allocation2] sm:$0xf] %vm217_vm7, %v215_v10  ;;  %v887_v21 = vld [vmem:[%s2552_s28 + $0x14] sm:$0xf] }
  0x68   : > { %763 = vrot.lane.b32.xlu0 %v760_v55, %s2410_s27  ;;  %v543_v55 = vshll.u32 %v519_v39, 16  ;;  %v943_v29 = vld [vmem:[%s2552_s28 + $0x14] sm:$0xe]  ;;  %v894_v33 = vshll.u32 %v887_v21, 16 }
  0x69   : > { %782 = vrot.lane.b32.xlu1 %v778_v59, %s2407_s17  ;;  %v498_v59 = vld [vmem:[%s2552_s28 + $0xc] sm:$0x1]  ;;  %v568_v58 = vsel %vm2554_vm4, %v566_v45, %v567_v46  ;;  %v950_v45 = vshll.u32 %v943_v29, 16  ;;  %v923_v46 = vld [vmem:[%s2552_s28 + $0x18] sm:$0xf] }
  0x6a   : > { %v545_v4 = vrot.slane %v543_v55, 6  ;;  %v507_v2 = vrot.slane %v498_v59, 5  ;;  %v616_v59 = vld [vmem:[%s2552_s28 + $0x4] sm:$0x8] }
  0x6b   : > { %761 = vrot.lane.b32.xlu2 %v750_v6, %s2410_s27  ;;  %v506_v6 = vrot.slane %v504_v30, 4  ;;  %v577_v30 = vld [vmem:[%s2552_s28 + $0x4] sm:$0xc] }
  0x6c   : > { %v546_v14 = vor.u32 %v545_v4, %v542_v62  ;;  %v581_v43 = vshrl.u32 %v577_v30, 16  ;;  %v584_v44 = vshll.u32 %v577_v30, 16  ;;  %v646_v62 = vshrl.u32 %v638_v51, 16 }
  0x6d   : > { %v508_v15 = vsel %vm2565_vm5, %v506_v6, %v507_v2  ;;  %v888_v2 = vld [vmem:[%s2552_s28 + $0x18] sm:$0xf]  ;;  %v891_v30 = vshrl.u32 %v887_v21, 16  ;;  %v1315_v21 = vld [vmem:[%s2552_s28 + $0x24] sm:$0x1] }
  0x6e   : > { %v547_v25 = vsel %vm2600_vm11, %v538_v13, %v546_v14  ;;  %v583_v56 = vrot.slane %v581_v43, 6  ;;  %v586_v57 = vrot.slane %v584_v44, 7  ;;  %v648_v11 = vrot.slane %v646_v62, 7 }
  0x6f   : > { %v649_v13 = vshll.u32 %v638_v51, 16  ;;  %v900_v14 = vshll.u32 %v888_v2, 16  ;;  %v947_v44 = vshrl.u32 %v943_v29, 16  ;;  %v671_v29 = vld [vmem:[%s2552_s28 + $0xc] sm:$0xf] }
  0x70   : > { %488 = vrot.lane.b32.xlu0 %v477_v16, %s2409_s29  ;;  %v1957_v16 = vrot.slane %v854_v8, 11  ;;  %v587_v6 = vor.u32 %v586_v57, %v583_v56  ;;  %v624_v8 = vrot.slane %v617_v60, 7  ;;  %v653_v34 = vrot.slane %v648_v11, 4  ;;  %v945_v57 = vld [vmem:[%s2552_s28 + $0x1c] sm:$0x3] }
  0x71   : > { %490 = vrot.lane.b32.xlu1 %v487_v20, %s2409_s29  ;;  %v590_v20 = vshrl.u32 %v578_v12, 16  ;;  %v641_v12 = vshrl.u32 %v637_v63, 16  ;;  %v651_v24 = vor.u32 %v649_v13, %v648_v11  ;;  %v949_v60 = vrot.slane %v947_v44, 5  ;;  %673 = vst.msk [vmem:[#allocation2 + $0x14] sm:$0xf] %vm217_vm7, %v671_v29 }
  0x72   : > { %v865_v28 = vsel %vm2652_vm6, %v1957_v16, %v864_v17  ;;  %v588_v17 = vrot.slane %v587_v6, 4 }
  0x73   : > { %784 = vrot.lane.b32.xlu2 %v781_v26, %s2407_s17  ;;  %v579_v26 = vld [vmem:[%s2552_s28 + $0xc] sm:$0x7]  ;;  %v592_v35 = vrot.slane %v590_v20, 6 }
  0x74   : > { %v600_v39 = vshrl.u32 %v579_v26, 16  ;;  %v603_v40 = vshll.u32 %v579_v26, 16 }
  0x75   : > { %v596_v48 = vor.u32 %v595_v38, %v592_v35  ;;  %v216_v38 = vld [vmem:[%s2552_s28 + $0x4] sm:$0xf] }
  0x76   : > { %v602_v49 = vrot.slane %v600_v39, 6  ;;  %219 = vst.msk [vmem:[#allocation2 + $0xc] sm:$0xf] %vm217_vm7, %v216_v38 }
  0x77   : > { %v598_v1 = vrot.slane %v596_v48, 4  ;;  %v597_v27 = vsel %vm2623_vm0, %v588_v17, %v596_v48 }
  0x78   : > { %823 = vrot.lane.b32.xlu0 %v820_v36, %s2411_s30  ;;  %v537_v36 = vsel %vm2600_vm11, %v528_v23, %v536_v3  ;;  %v1953_v23 = vrot.slane %v641_v12, 11 }
  0x79   : > { %509 = vrot.lane.b32.xlu1 %v505_v42, %s2408_s24  ;;  %v871_v42 = vshll.u32 %v852_v18, 16 }
  0x7a   : > { %v652_v39 = vsel %vm2652_vm6, %v1953_v23, %v651_v24 }
  0x7b   : > { %821 = vrot.lane.b32.xlu2 %v810_v50, %s2411_s30  ;;  %v605_v50 = vrot.slane %v603_v40, 7  ;;  %v873_v55 = vor.u32 %v871_v42, %v870_v41  ;;  %v944_v40 = vld [vmem:[%s2552_s28 + $0x18] sm:$0xf]  ;;  %v922_v41 = vld [vmem:[%s2552_s28 + $0x14] sm:$0xe] }
  0x7c   : > { %v959_v56 = vshll.u32 %v944_v40, 16 }
  0x7d   : > { %v606_v3 = vor.u32 %v605_v50, %v602_v49  ;;  %v874_v4 = vsel %vm2652_vm6, %v866_v54, %v873_v55  ;;  %v893_v49 = vrot.slane %v891_v30, 4  ;;  %v896_v50 = vrot.slane %v894_v33, 5  ;;  %v670_v30 = vld [vmem:[%s2552_s28 + $0x8] sm:$0xf] }
  0x7e   : > { %v956_v55 = vshrl.u32 %v944_v40, 16  ;;  %672 = vst.msk [vmem:[#allocation2 + $0x8] sm:$0xf] %vm217_vm7, %v670_v30  ;;  %v1336_v40 = vshll.u32 %v1315_v21, 16 }
  0x7f   : > { %v607_v16 = vsel %vm2623_vm0, %v598_v1, %v606_v3  ;;  %v897_v3 = vor.u32 %v896_v50, %v893_v49  ;;  %v1349_v49 = vld [vmem:[%s2552_s28 + $0x20] sm:$0xf] }
  0x80   : > { %842 = vrot.lane.b32.xlu0 %v838_v61, %s2412_s21  ;;  %v639_v61 = vld [vmem:[%s2552_s28 + $0xc] sm:$0xf]  ;;  %v958_v6 = vrot.slane %v956_v55, 5 }
  0x81   : > { %844 = vrot.lane.b32.xlu1 %v841_v5, %s2412_s21  ;;  %v1952_v5 = vrot.slane %v616_v59, 11  ;;  %v655_v9 = vshrl.u32 %v639_v61, 16  ;;  %v658_v20 = vshll.u32 %v639_v61, 16  ;;  %v930_v59 = vrot.slane %v923_v46, 5 }
  0x82   : > { %v952_v61 = vrot.slane %v950_v45, 6  ;;  %v898_v13 = vrot.slane %v897_v3, 4  ;;  %v1348_v3 = vld [vmem:[%s2552_s28 + $0x1c] sm:$0xe] }
  0x83   : > { %511 = vrot.lane.b32.xlu2 %v508_v15, %s2408_s24  ;;  %v904_v15 = vshrl.u32 %v888_v2, 16  ;;  %v625_v18 = vsel %vm2632_vm1, %v1952_v5, %v624_v8  ;;  %v657_v19 = vrot.slane %v655_v9, 7  ;;  %v961_v2 = vrot.slane %v959_v56, 6 }
  0x84   : > { %v966_v5 = vshrl.u32 %v945_v57, 16  ;;  %v953_v9 = vor.u32 %v952_v61, %v949_v60 }
  0x85   : > { %v906_v26 = vrot.slane %v904_v15, 4  ;;  %v660_v35 = vor.u32 %v658_v20, %v657_v19  ;;  %v962_v15 = vor.u32 %v961_v2, %v958_v6  ;;  %v1313_v19 = vld [vmem:[%s2552_s28 + $0x1c] sm:$0xf] }
  0x86   : > { %v954_v20 = vrot.slane %v953_v9, 4 }
  0x87   : > { %v661_v51 = vsel %vm2652_vm6, %v653_v34, %v660_v35  ;;  %v964_v34 = vrot.slane %v962_v15, 4 }
  0x88   : > { %550 = vrot.lane.b32.xlu0 %v547_v25, %s2410_s27  ;;  %v2776_v25 = vrot.slane %v900_v14, 5 }
  0x89   : > { %875 = vrot.lane.b32.xlu1 %v865_v28, %s2413_s25  ;;  %v889_v28 = vld [vmem:[%s2552_s28 + $0x1c] sm:$0x1] }
  0x8a   : > { %v907_v42 = vor.u32 %v906_v26, %v2776_v25  ;;  %v910_v43 = vshll.u32 %v889_v28, 16  ;;  %v903_v26 = vsel %vm2585_vm10, %v898_v13, %v2776_v25  ;;  %v1320_v28 = vshll.u32 %v1313_v19, 16  ;;  %v1003_v13 = vld [vmem:[%s2552_s28 + $0x14] sm:$0xc] }
  0x8b   : > { %548 = vrot.lane.b32.xlu2 %v537_v36, %s2410_s27  ;;  %v618_v36 = vld [vmem:[%s2552_s28 + $0xc] sm:$0x7] }
  0x8c   : > { %v627_v48 = vrot.slane %v618_v36, 7  ;;  %v908_v62 = vrot.slane %v907_v42, 4  ;;  %v912_v63 = vrot.slane %v910_v43, 5  ;;  %v924_v36 = vld [vmem:[%s2552_s28 + $0x1c] sm:$0x1]  ;;  %v1322_v44 = vrot.slane %v1320_v28, 5 }
  0x8d   : > { %v933_v42 = vrot.slane %v924_v36, 5 }
  0x8e   : > { %v913_v12 = vsel %vm2585_vm10, %v908_v62, %v912_v63  ;;  %v1356_v62 = vrot.slane %v1349_v49, 5  ;;  %v1369_v63 = vld [vmem:[%s2552_s28 + $0x1c] sm:$0xe] }
  0x90   : > { %569 = vrot.lane.b32.xlu0 %v565_v47, %s2407_s17  ;;  %v626_v47 = vrot.slane %v624_v8, 4  ;;  %v969_v8 = vshll.u32 %v945_v57, 16  ;;  %v1004_v57 = vld [vmem:[%s2552_s28 + $0x18] sm:$0xf] }
  0x91   : > { %571 = vrot.lane.b32.xlu1 %v568_v58, %s2407_s17  ;;  %v1958_v58 = vrot.slane %v922_v41, 9  ;;  %v932_v41 = vrot.slane %v930_v59, 4  ;;  %v1019_v6 = vshll.u32 %v1004_v57, 16 }
  0x92   : > { %v628_v1 = vsel %vm2632_vm1, %v626_v47, %v627_v48  ;;  %v971_v17 = vrot.slane %v969_v8, 6  ;;  %v982_v47 = vld [vmem:[%s2552_s28 + $0x14] sm:$0xc]  ;;  %v2832_v48 = vld [vmem:[%s2552_s28 + $0x18] sm:$0xf] }
  0x93   : > { %877 = vrot.lane.b32.xlu2 %v874_v4, %s2413_s25  ;;  %v1314_v4 = vld [vmem:[%s2552_s28 + $0x20] sm:$0xf]  ;;  %v931_v14 = vsel %vm2565_vm5, %v1958_v58, %v930_v59  ;;  %v934_v55 = vsel %vm2565_vm5, %v932_v41, %v933_v42  ;;  %v1959_v59 = vrot.slane %v982_v47, 10  ;;  %v990_v60 = vrot.slane %v2832_v48, 6  ;;  %v1005_v8 = vld [vmem:[%s2552_s28 + $0x1c] sm:$0x7] }
  0x94   : > { %v1326_v10 = vshll.u32 %v1314_v4, 16  ;;  %v1330_v11 = vshrl.u32 %v1314_v4, 16  ;;  %v1016_v4 = vshrl.u32 %v1004_v57, 16 }
  0x95   : > { %v991_v9 = vsel %vm2554_vm4, %v1959_v59, %v990_v60 }
  0x96   : > { %v2813_v23 = vrot.slane %v1326_v10, 5  ;;  %v1332_v24 = vrot.slane %v1330_v11, 4  ;;  %v1373_v11 = vshrl.u32 %v1369_v63, 16 }
  0x98   : > { %610 = vrot.lane.b32.xlu0 %v607_v16, %s2411_s30  ;;  %v968_v16 = vrot.slane %v966_v5, 5  ;;  %v1333_v25 = vor.u32 %v1332_v24, %v2813_v23  ;;  %v1375_v29 = vrot.slane %v1373_v11, 5 }
  0x99   : > { %629 = vrot.lane.b32.xlu1 %v625_v18, %s2412_s21 }
  0x9a   : > { %v972_v35 = vor.u32 %v971_v17, %v968_v16  ;;  %v1334_v50 = vrot.slane %v1333_v25, 4  ;;  %v1370_v16 = vld [vmem:[%s2552_s28 + $0x20] sm:$0xf]  ;;  %v1021_v17 = vrot.slane %v1019_v6, 7 }
  0x9b   : > { %608 = vrot.lane.b32.xlu2 %v597_v27, %s2411_s30  ;;  %v1317_v27 = vshrl.u32 %v1313_v19, 16  ;;  %v1026_v19 = vshrl.u32 %v1005_v8, 16 }
  0x9c   : > { %v973_v45 = vsel %vm2600_vm11, %v964_v34, %v972_v35  ;;  %v1385_v34 = vshll.u32 %v1370_v16, 16  ;;  %v984_v35 = vld [vmem:[%s2552_s28 + $0x1c] sm:$0x3] }
  0x9d   : > { %v2795_v54 = vpop.permute.xlu2 %318  ;;  %v1319_v43 = vrot.slane %v1317_v27, 4  ;;  %v1010_v27 = vshll.u32 %v1003_v13, 16  ;;  %v993_v41 = vrot.slane %v984_v35, 6  ;;  %v2123_v35 = vld [vmem:[%s2540_s20 + $0xa8] sm:$0xff] }
  0x9e   : > { %v1387_v47 = vrot.slane %v1385_v34, 6 }
  0x9f   : > { %v1323_v56 = vor.u32 %v1322_v44, %v1319_v43  ;;  %v1012_v43 = vrot.slane %v1010_v27, 7 }
  0xa0   : > { %662 = vrot.lane.b32.xlu0 %v652_v39, %s2413_s25  ;;  %v963_v39 = vsel %vm2600_vm11, %v954_v20, %v962_v15  ;;  %v1966_v15 = vrot.slane %v1348_v3, 9  ;;  %v1029_v20 = vshll.u32 %v1005_v8, 16  ;;  %v1042_v3 = vld [vmem:[%s2552_s28 + $0x14] sm:$0x8] }
  0xa1   : > { %664 = vrot.lane.b32.xlu1 %v661_v51, %s2413_s25  ;;  %v1338_v51 = vrot.slane %v1336_v40, 5  ;;  %v1324_v5 = vrot.slane %v1323_v56, 4  ;;  %v992_v40 = vrot.slane %v990_v60, 4  ;;  %v458_v56 = vld [vmem:[%s2552_s28 + $0x8] sm:$0xf] }
  0xa2   : > { %v1031_v25 = vrot.slane %v1029_v20, 7  ;;  %v1371_v60 = vld [vmem:[%s2552_s28 + $0x24] sm:$0x3]  ;;  %460 = vst.msk [vmem:[#allocation2 + $0x10] sm:$0xf] %vm217_vm7, %v458_v56 }
  0xa3   : > { %631 = vrot.lane.b32.xlu2 %v628_v1, %s2412_s21  ;;  %v1350_v1 = vld [vmem:[%s2552_s28 + $0x24] sm:$0x1]  ;;  %v1339_v2 = vsel %vm2585_vm10, %v1334_v50, %v1338_v51  ;;  %v1329_v24 = vsel %vm2585_vm10, %v1324_v5, %v2813_v23  ;;  %v1028_v23 = vrot.slane %v1026_v19, 6  ;;  %v994_v50 = vsel %vm2554_vm4, %v992_v40, %v993_v41  ;;  %v1043_v51 = vld [vmem:[%s2552_s28 + $0x18] sm:$0xf] }
  0xa4   : > { %v1359_v21 = vrot.slane %v1350_v1, 5  ;;  %v1050_v1 = vrot.slane %v1043_v51, 7  ;;  %v1392_v5 = vshrl.u32 %v1371_v60, 16  ;;  %v1395_v8 = vshll.u32 %v1371_v60, 16  ;;  %v2124_v19 = vld [vmem:[%s2540_s20 + $0xb0] sm:$0xff]  ;;  %v2122_v51 = vld [vmem:[%s2540_s20 + $0xa0] sm:$0xff] }
  0xa5   : > { %v2808_v18 = vpop.permute.xlu2 %320  ;;  %v1032_v49 = vor.u32 %v1031_v25, %v1028_v23  ;;  %v1410_v41 = vld [vmem:[%s2552_s28 + $0x24] sm:$0x3]  ;;  %v1065_v60 = vld [vmem:[%s2552_s28 + $0x1c] sm:$0xf] }
  0xa8   : > { %916 = vrot.lane.b32.xlu0 %v913_v12, %s2409_s29  ;;  %v1376_v12 = vshll.u32 %v1369_v63, 16  ;;  %v457_v63 = vld [vmem:[%s2552_s28 + $0x4] sm:$0xf] }
  0xa9   : > { %935 = vrot.lane.b32.xlu1 %v931_v14, %s2408_s24  ;;  %v1358_v14 = vrot.slane %v1356_v62, 4  ;;  %459 = vst.msk [vmem:[#allocation2 + $0x4] sm:$0xf] %vm217_vm7, %v457_v63 }
  0xaa   : > { %v344_v33 = vpop.permute.xlu0 %343  ;;  %v1378_v30 = vrot.slane %v1376_v12, 6  ;;  %v1064_v12 = vld [vmem:[%s2552_s28 + $0x18] sm:$0xf] }
  0xab   : > { %v276_v38 = vpop.permute.xlu1 %275  ;;  %914 = vrot.lane.b32.xlu2 %v903_v26, %s2409_s29  ;;  %v1007_v26 = vshrl.u32 %v1003_v13, 16  ;;  %v1360_v44 = vsel %vm2565_vm5, %v1358_v14, %v1359_v21  ;;  %v1960_v14 = vrot.slane %v1042_v3, 11  ;;  %v1063_v21 = vld [vmem:[%s2552_s28 + $0x14] sm:$0x8]  ;;  %v1075_v40 = vshll.u32 %v1064_v12, 16 }
  0xad   : > { %v387_v46 = vpop.permute.xlu2 %386  ;;  %v1009_v42 = vrot.slane %v1007_v26, 6  ;;  %v2917_v26 = vld [vmem:[%s2552_s28 + $0x20] sm:$0xf]  ;;  %v1051_v34 = vsel %vm2632_vm1, %v1960_v14, %v1050_v1  ;;  %v1429_v14 = vld [vmem:[%s2552_s28 + $0x1c] sm:$0xc] }
  0xb0   : > { %974 = vrot.lane.b32.xlu0 %v963_v39, %s2410_s27 }
  0xb1   : > { %976 = vrot.lane.b32.xlu1 %v973_v45, %s2410_s27  ;;  %v1379_v45 = vor.u32 %v1378_v30, %v1375_v29 }
  0xb2   : > { %v251_v58 = vpop.permute.xlu0 %250 }
  0xb3   : > { %v278_v61 = vpop.permute.xlu1 %277  ;;  %257 = vst.msk [vmem:[#allocation2] sm:$0xf] %vm256_vm8, %v251_v58  ;;  %937 = vrot.lane.b32.xlu2 %v934_v55, %s2408_s24  ;;  %v1013_v55 = vor.u32 %v1012_v43, %v1009_v42  ;;  %v1380_v58 = vrot.slane %v1379_v45, 4 }
  0xb4   : > { %282 = vst.msk [vmem:[#allocation2] sm:$0xf] %vm281_vm9, %v276_v38  ;;  %v1357_v38 = vsel %vm2565_vm5, %v1966_v15, %v1356_v62  ;;  %v1044_v62 = vld [vmem:[%s2552_s28 + $0x1c] sm:$0x7]  ;;  %v1100_v15 = vld [vmem:[%s2552_s28 + $0x18] sm:$0xf] }
  0xb5   : > { %325 = vst.msk [vmem:[#allocation2] sm:$0xf] %vm324_vm12, %v2795_v54  ;;  %v2855_v10 = vpop.permute.xlu2 %413  ;;  %v1018_v54 = vrot.slane %v1016_v4, 6  ;;  %v2125_v4 = vld [vmem:[%s2540_s20 + $0xb8] sm:$0xff]  ;;  %v1053_v13 = vrot.slane %v1044_v62, 7  ;;  %v1104_v29 = vshrl.u32 %v1100_v15, 16 }
  0xb6   : > { %350 = vst.msk [vmem:[#allocation2] sm:$0xf] %vm349_vm13, %v344_v33  ;;  %v1382_v33 = vshrl.u32 %v1370_v16, 16  ;;  %1792 = vmatpush.bf16.msra.mxu2 %v2125_v4  ;;  %v1107_v30 = vshll.u32 %v1100_v15, 16  ;;  %v1102_v62 = vld [vmem:[%s2552_s28 + $0x20] sm:$0x1] }
  0xb7   : > { %393 = vst.msk [vmem:[#allocation2] sm:$0xf] %vm392_vm14, %v387_v46  ;;  %v2871_v39 = vor.u32 %v1021_v17, %v1018_v54  ;;  %v1394_v54 = vrot.slane %v1392_v5, 5  ;;  %v1397_v17 = vrot.slane %v1395_v8, 6  ;;  %v1106_v45 = vrot.slane %v1104_v29, 4 }
  0xb8   : > { %1342 = vrot.lane.b32.xlu0 %v1339_v2, %s2409_s29  ;;  %v1384_v46 = vrot.slane %v1382_v33, 5  ;;  %v1014_v2 = vrot.slane %v1013_v55, 4  ;;  %v1431_v5 = vld [vmem:[%s2552_s28 + $0x24] sm:$0x7]  ;;  %v1081_v8 = vshrl.u32 %v1065_v60, 16 }
  0xb9   : > { %995 = vrot.lane.b32.xlu1 %v991_v9, %s2407_s17  ;;  %v1398_v23 = vor.u32 %v1397_v17, %v1394_v54  ;;  %v1452_v17 = vshrl.u32 %v1431_v5, 16 }
  0xba   : > { %v253_v28 = vpop.permute.xlu0 %252  ;;  %v2886_v59 = vor.u32 %v1387_v47, %v1384_v46  ;;  %v1023_v16 = vsel %vm2623_vm0, %v1014_v2, %v2871_v39  ;;  %1793 = vmatpush.bf16.msra.mxu2 %v2124_v19  ;;  %v1109_v46 = vrot.slane %v1107_v30, 5  ;;  %v1430_v47 = vld [vmem:[%s2552_s28 + $0x20] sm:$0xf]  ;;  %v1455_v19 = vshll.u32 %v1431_v5, 16 }
  0xbb   : > { %v346_v36 = vpop.permute.xlu1 %345  ;;  %258 = vst.msk [vmem:[#allocation2 + $0xc] sm:$0xf] %vm256_vm8, %v253_v28  ;;  %1340 = vrot.lane.b32.xlu2 %v1329_v24, %s2409_s29  ;;  %v1072_v24 = vshrl.u32 %v1064_v12, 16  ;;  %v1101_v28 = vld [vmem:[%s2552_s28 + $0x1c] sm:$0xf]  ;;  %v1445_v4 = vshll.u32 %v1430_v47, 16 }
  0xbc   : > { %283 = vst.msk [vmem:[#allocation2 + $0xc] sm:$0xf] %vm281_vm9, %v278_v61  ;;  %v1389_v9 = vsel %vm2600_vm11, %v1380_v58, %v2886_v59  ;;  %v1113_v43 = vshll.u32 %v1101_v28, 16  ;;  %v1110_v63 = vor.u32 %v1109_v46, %v1106_v45 }
  0xbd   : > { %326 = vst.msk [vmem:[#allocation2 + $0xc] sm:$0xf] %vm324_vm12, %v2808_v18  ;;  %v704_v48 = vpop.permute.xlu2 %703  ;;  %v1024_v18 = vrot.slane %v2871_v39, 4  ;;  %v1390_v39 = vrot.slane %v2886_v59, 4  ;;  %v2930_v25 = vrot.slane %v1072_v24, 7  ;;  %v1447_v54 = vrot.slane %v1445_v4, 7 }
  0xbe   : > { %351 = vst.msk [vmem:[#allocation2 + $0xc] sm:$0xf] %vm349_vm13, %v346_v36  ;;  %v1067_v36 = vshrl.u32 %v1063_v21, 16  ;;  %1794 = vmatpush.bf16.msra.mxu2 %v2123_v35  ;;  %v2943_v58 = vrot.slane %v1113_v43, 5  ;;  %v1111_v15 = vrot.slane %v1110_v63, 4  ;;  %v1084_v21 = vshll.u32 %v1065_v60, 16 }
  0xbf   : > { %708 = vst.msk [vmem:[#allocation2 + $0x14] sm:$0xf] %vm256_vm8, %v704_v48  ;;  %v1033_v6 = vsel %vm2623_vm0, %v1024_v18, %v1032_v49  ;;  %v1419_v18 = vrot.slane %v1410_v41, 6  ;;  %v1399_v49 = vsel %vm2600_vm11, %v1390_v39, %v1398_v23  ;;  %v1433_v24 = vshrl.u32 %v1429_v14, 16  ;;  %v2117_v39 = vld [vmem:[%s2540_s20 + $0x78] sm:$0xff]  ;;  %v2119_v23 = vld [vmem:[%s2540_s20 + $0x88] sm:$0xff] }
  0xc0   : > { %1361 = vrot.lane.b32.xlu0 %v1357_v38, %s2408_s24  ;;  %v1416_v38 = vrot.slane %v2917_v26, 6  ;;  %v1961_v56 = vrot.slane %v1067_v36, 11  ;;  %v1436_v26 = vshll.u32 %v1429_v14, 16  ;;  %v1454_v36 = vrot.slane %v1452_v17, 6  ;;  %1773 = vmatpush.bf16.msra.mxu1 %v2117_v39  ;;  %v1468_v60 = vld [vmem:[%s2552_s28 + $0x1c] sm:$0x8] }
  0xc1   : > { %1363 = vrot.lane.b32.xlu1 %v1360_v44, %s2408_s24  ;;  %v1117_v44 = vshrl.u32 %v1101_v28, 16  ;;  %v1435_v43 = vrot.slane %v1433_v24, 6  ;;  %v2115_v4 = vld [vmem:[%s2540_s20 + $0x68] sm:$0xff] }
  0xc2   : > { %v389_v57 = vpop.permute.xlu0 %388  ;;  %v1418_v48 = vrot.slane %v1416_v38, 4  ;;  %1795 = vmatpush.bf16.msra.mxu2 %v2122_v51  ;;  %v2118_v51 = vld [vmem:[%s2540_s20 + $0x80] sm:$0xff] }
  0xc3   : > { %v412_v61 = vpop.permute.xlu1 %411  ;;  %394 = vst.msk [vmem:[#allocation2 + $0xc] sm:$0xf] %vm392_vm14, %v389_v57  ;;  %997 = vrot.lane.b32.xlu2 %v994_v50, %s2407_s17  ;;  %v1408_v50 = vld [vmem:[%s2552_s28 + $0x1c] sm:$0xc]  ;;  %v1077_v57 = vor.u32 %v1075_v40, %v2930_v25  ;;  %v1119_v59 = vrot.slane %v1117_v44, 4  ;;  %v1079_v40 = vrot.slane %v2930_v25, 4 }
  0xc4   : > { %418 = vst.msk [vmem:[#allocation2] sm:$0xf] %vm417_vm15, %v412_v61  ;;  %v1967_v3 = vrot.slane %v1408_v50, 10  ;;  %v1420_v2 = vsel %vm2554_vm4, %v1418_v48, %v1419_v18  ;;  %v1438_v44 = vrot.slane %v1436_v26, 7  ;;  %v2983_v48 = vld [vmem:[%s2552_s28 + $0x1c] sm:$0xf] }
  0xc5   : > { %419 = vst.msk [vmem:[#allocation2 + $0xc] sm:$0xf] %vm417_vm15, %v2855_v10  ;;  %v2904_v11 = vpop.permute.xlu2 %761  ;;  %v1052_v10 = vrot.slane %v1050_v1, 4  ;;  %v1442_v1 = vshrl.u32 %v1430_v47, 16  ;;  %v1120_v12 = vor.u32 %v1119_v59, %v2943_v58  ;;  %v1135_v47 = vld [vmem:[%s2552_s28 + $0x18] sm:$0xe] }
  0xc6   : > { %v1439_v18 = vor.u32 %v1438_v44, %v1435_v43  ;;  %v2116_v50 = vld [vmem:[%s2540_s20 + $0x70] sm:$0xff] }
  0xc7   : > { %v1054_v33 = vsel %vm2632_vm1, %v1052_v10, %v1053_v13  ;;  %v1123_v10 = vshll.u32 %v1102_v62, 16  ;;  %v1121_v29 = vrot.slane %v1120_v12, 4  ;;  %v1469_v59 = vld [vmem:[%s2552_s28 + $0x20] sm:$0xf]  ;;  %1774 = vmatpush.bf16.msra.mxu1 %v2116_v50  ;;  %v1968_v12 = vrot.slane %v1468_v60, 11 }
  0xc8   : > { %1036 = vrot.lane.b32.xlu0 %v1033_v6, %s2411_s30  ;;  %v2121_v6 = vld [vmem:[%s2540_s20 + $0x98] sm:$0xff]  ;;  %v1476_v5 = vrot.slane %v1469_v59, 7  ;;  %v883_v50 = vld [vmem:[%s2552_s28 + $0x14] sm:$0xf]  ;;  %v1195_v59 = vld [vmem:[%s2552_s28 + $0x18] sm:$0xc] }
  0xc9   : > { %1400 = vrot.lane.b32.xlu1 %v1389_v9, %s2410_s27  ;;  %v1078_v9 = vsel %vm2652_vm6, %v1961_v56, %v1077_v57  ;;  %1796 = vmatpush.bf16.msra.mxu2 %v2121_v6  ;;  %v1125_v30 = vrot.slane %v1123_v10, 5  ;;  %v1962_v56 = vrot.slane %v1135_v47, 9  ;;  %v1143_v57 = vrot.slane %v2983_v48, 5  ;;  %v1156_v6 = vld [vmem:[%s2552_s28 + $0x18] sm:$0xe] }
  0xca   : > { %v449_v20 = vpop.permute.xlu0 %448  ;;  %v1490_v10 = vld [vmem:[%s2552_s28 + $0x20] sm:$0xf]  ;;  %v1160_v14 = vshrl.u32 %v1156_v6, 16  ;;  %v1478_v24 = vrot.slane %v1476_v5, 4  ;;  %v1217_v48 = vld [vmem:[%s2552_s28 + $0x1c] sm:$0xf] }
  0xcb   : > { %v702_v27 = vpop.permute.xlu1 %701  ;;  %455 = vst.msk [vmem:[#allocation2] sm:$0xf] %vm454_vm2, %v449_v20  ;;  %1034 = vrot.lane.b32.xlu2 %v1023_v16, %s2411_s30  ;;  %v1444_v16 = vrot.slane %v1442_v1, 6  ;;  %v1083_v20 = vrot.slane %v1081_v8, 7  ;;  %v1126_v45 = vsel %vm2585_vm10, %v1121_v29, %v1125_v30  ;;  %1775 = vmatpush.bf16.msra.mxu1 %v2115_v4  ;;  %v1477_v30 = vsel %vm2632_vm1, %v1968_v12, %v1476_v5  ;;  %v1216_v5 = vld [vmem:[%s2552_s28 + $0x18] sm:$0xc] }
  0xcc   : > { %707 = vst.msk [vmem:[#allocation2 + $0x8] sm:$0xf] %vm256_vm8, %v702_v27  ;;  %v2120_v27 = vld [vmem:[%s2540_s20 + $0x90] sm:$0xff]  ;;  %v1229_v60 = vshrl.u32 %v1217_v48, 16 }
  0xcd   : > { %v2933_v42 = vpop.permute.xlu2 %784  ;;  %1797 = vmatpush.bf16.msra.mxu2 %v2120_v27  ;;  %v2971_v35 = vor.u32 %v1447_v54, %v1444_v16  ;;  %v1086_v41 = vor.u32 %v1084_v21, %v1083_v20  ;;  %v2114_v20 = vld [vmem:[%s2540_s20 + $0x60] sm:$0xff]  ;;  %v1498_v27 = vshrl.u32 %v1490_v10, 16  ;;  %885 = vst.msk [vmem:[#allocation2 + $0x18] sm:$0xf] %vm217_vm7, %v883_v50 }
  0xce   : > { %v1231_v12 = vrot.slane %v1229_v60, 6 }
  0xcf   : > { %v1450_v25 = vrot.slane %v2971_v35, 4  ;;  %v1087_v31 = vsel %vm2652_vm6, %v1079_v40, %v1086_v41  ;;  %1776 = vmatpush.bf16.msra.mxu1 %v2114_v20  ;;  %v2113_v41 = vld [vmem:[%s2540_s20 + $0x58] sm:$0xff]  ;;  %v3028_v44 = vrot.slane %v1498_v27, 7 }
  0xd0   : > { %1055 = vrot.lane.b32.xlu0 %v1051_v34, %s2412_s21  ;;  %v1116_v34 = vsel %vm2585_vm10, %v1111_v15, %v2943_v58  ;;  %v1163_v15 = vshll.u32 %v1156_v6, 16 }
  0xd1   : > { %1057 = vrot.lane.b32.xlu1 %v1054_v33, %s2412_s21  ;;  %1798 = vmatpush.bf16.msra.mxu2 %v2119_v23  ;;  %v1145_v23 = vrot.slane %v1143_v57, 4 }
  0xd2   : > { %v723_v55 = vpop.permute.xlu0 %722 }
  0xd3   : > { %v725_v61 = vpop.permute.xlu1 %724  ;;  %728 = vst.msk [vmem:[#allocation2 + $0x8] sm:$0xf] %vm281_vm9, %v723_v55  ;;  %1402 = vrot.lane.b32.xlu2 %v1399_v49, %s2410_s27  ;;  %v1157_v49 = vld [vmem:[%s2552_s28 + $0x1c] sm:$0xf]  ;;  %1777 = vmatpush.bf16.msra.mxu1 %v2113_v41 }
  0xd4   : > { %729 = vst.msk [vmem:[#allocation2 + $0x14] sm:$0xf] %vm281_vm9, %v725_v61  ;;  %v1158_v61 = vld [vmem:[%s2552_s28 + $0x20] sm:$0x3]  ;;  %v1169_v62 = vshrl.u32 %v1157_v49, 16  ;;  %v1172_v63 = vshll.u32 %v1157_v49, 16 }
  0xd5   : > { %767 = vst.msk [vmem:[#allocation2 + $0x8] sm:$0xf] %vm324_vm12, %v2904_v11  ;;  %v822_v13 = vpop.permute.xlu2 %821  ;;  %v1417_v11 = vsel %vm2554_vm4, %v1967_v3, %v1416_v38  ;;  %v1457_v38 = vrot.slane %v1455_v19, 7  ;;  %1799 = vmatpush.bf16.msra.mxu2 %v2118_v51  ;;  %v1440_v3 = vrot.slane %v1439_v18, 4  ;;  %v1182_v19 = vshll.u32 %v1158_v61, 16  ;;  %v2112_v49 = vld [vmem:[%s2540_s20 + $0x50] sm:$0xff] }
  0xd6   : > { %v1171_v54 = vrot.slane %v1169_v62, 5  ;;  %v1174_v17 = vrot.slane %v1172_v63, 6  ;;  %v2111_v62 = vld [vmem:[%s2540_s20 + $0x48] sm:$0xff] }
  0xd7   : > { %v1449_v16 = vsel %vm2623_vm0, %v1440_v3, %v2971_v35  ;;  %v1162_v35 = vrot.slane %v1160_v14, 5  ;;  %v1184_v39 = vrot.slane %v1182_v19, 6  ;;  %1778 = vmatpush.bf16.msra.mxu1 %v2112_v49  ;;  %v1223_v19 = vshll.u32 %v1216_v5, 16  ;;  %v1309_v41 = vld [vmem:[%s2552_s28 + $0x1c] sm:$0xf] }
  0xd8   : > { %1423 = vrot.lane.b32.xlu0 %v1420_v2, %s2407_s17  ;;  %v1144_v2 = vsel %vm2565_vm5, %v1962_v56, %v1143_v57  ;;  %v1196_v56 = vld [vmem:[%s2552_s28 + $0x1c] sm:$0xf]  ;;  %v1491_v57 = vld [vmem:[%s2552_s28 + $0x24] sm:$0xf]  ;;  %1311 = vst.msk [vmem:[#allocation2 + $0x20] sm:$0xf] %vm217_vm7, %v1309_v41 }
  0xd9   : > { %1088 = vrot.lane.b32.xlu1 %v1078_v9, %s2413_s25  ;;  %v1470_v9 = vld [vmem:[%s2552_s28 + $0x24] sm:$0x7]  ;;  %v1507_v3 = vshrl.u32 %v1491_v57, 16  ;;  %v1203_v6 = vrot.slane %v1196_v56, 6 }
  0xda   : > { %v764_v28 = vpop.permute.xlu0 %763  ;;  %v1479_v26 = vrot.slane %v1470_v9, 7  ;;  %v1963_v9 = vrot.slane %v1195_v59, 10 }
  0xdb   : > { %v783_v33 = vpop.permute.xlu1 %782  ;;  %768 = vst.msk [vmem:[#allocation2 + $0x14] sm:$0xf] %vm324_vm12, %v764_v28  ;;  %1421 = vrot.lane.b32.xlu2 %v1417_v11, %s2407_s17  ;;  %v1489_v11 = vld [vmem:[%s2552_s28 + $0x1c] sm:$0x8]  ;;  %v1137_v28 = vld [vmem:[%s2552_s28 + $0x20] sm:$0x1]  ;;  %1779 = vmatpush.bf16.msra.mxu1 %v2111_v62 }
  0xdc   : > { %788 = vst.msk [vmem:[#allocation2 + $0x8] sm:$0xf] %vm349_vm13, %v783_v33  ;;  %v1493_v33 = vshrl.u32 %v1489_v11, 16  ;;  %v1146_v40 = vrot.slane %v1137_v28, 5  ;;  %v1480_v43 = vsel %vm2632_vm1, %v1478_v24, %v1479_v26  ;;  %v1509_v11 = vrot.slane %v1507_v3, 7 }
  0xdd   : > { %789 = vst.msk [vmem:[#allocation2 + $0x14] sm:$0xf] %vm349_vm13, %v2933_v42  ;;  %v512_v46 = vpop.permute.xlu2 %511  ;;  %v1458_v42 = vor.u32 %v1457_v38, %v1454_v36  ;;  %v1165_v36 = vrot.slane %v1163_v15, 6  ;;  %v3023_v38 = vor.u32 %v1174_v17, %v1171_v54  ;;  %v1510_v54 = vshll.u32 %v1491_v57, 16  ;;  %v884_v26 = vld [vmem:[%s2552_s28 + $0x18] sm:$0xf] }
  0xde   : > { %827 = vst.msk [vmem:[#allocation2 + $0x8] sm:$0xf] %vm392_vm14, %v822_v13  ;;  %v1179_v13 = vshrl.u32 %v1158_v61, 16  ;;  %v1147_v18 = vsel %vm2565_vm5, %v1145_v23, %v1146_v40  ;;  %v1232_v61 = vshll.u32 %v1217_v48, 16  ;;  %v1220_v17 = vshrl.u32 %v1216_v5, 16 }
  0xdf   : > { %v1459_v1 = vsel %vm2623_vm0, %v1450_v25, %v1458_v42  ;;  %v1166_v47 = vor.u32 %v1165_v36, %v1162_v35  ;;  %v1969_v25 = vrot.slane %v1493_v33, 11  ;;  %v1177_v42 = vrot.slane %v3023_v38, 4  ;;  %886 = vst.msk [vmem:[#allocation2 + $0x24] sm:$0xf] %vm217_vm7, %v884_v26  ;;  %v422_v40 = vld [vmem:[%s2552_s28 + $0x8] sm:$0xf] }
  0xe0   : > { %1127 = vrot.lane.b32.xlu0 %v1116_v34, %s2409_s29  ;;  %v1181_v34 = vrot.slane %v1179_v13, 5  ;;  %v1234_v14 = vrot.slane %v1232_v61, 7  ;;  %v1204_v52 = vsel %vm2554_vm4, %v1963_v9, %v1203_v6  ;;  %v1505_v33 = vrot.slane %v3028_v44, 4  ;;  %v1257_v9 = vld [vmem:[%s2552_s28 + $0x20] sm:$0x7] }
  0xe1   : > { %1129 = vrot.lane.b32.xlu1 %v1126_v45, %s2409_s29  ;;  %v1501_v45 = vshll.u32 %v1490_v10, 16  ;;  %v1167_v7 = vrot.slane %v1166_v47, 4  ;;  %v2110_v10 = vld [vmem:[%s2540_s20 + $0x40] sm:$0xff]  ;;  %v1222_v35 = vrot.slane %v1220_v17, 6  ;;  %v1225_v36 = vrot.slane %v1223_v19, 7 }
  0xe2   : > { %v489_v55 = vpop.permute.xlu0 %488  ;;  %1780 = vmatpush.bf16.msra.mxu1 %v2110_v10  ;;  %v1235_v28 = vor.u32 %v1234_v14, %v1231_v12  ;;  %v441_v48 = vshrl.u32 %v422_v40, 16  ;;  %v444_v59 = vshll.u32 %v422_v40, 16  ;;  %v439_v3 = vrot.slane %v2640_v37, 4  ;;  %v1278_v12 = vld [vmem:[%s2552_s28 + $0x20] sm:$0xf]  ;;  %v2105_v40 = vld [vmem:[%s2540_s20 + $0x18] sm:$0xff] }
  0xe3   : > { %v491_v58 = vpop.permute.xlu1 %490  ;;  %494 = vst.msk [vmem:[#allocation2 + $0x4] sm:$0xf] %vm256_vm8, %v489_v55  ;;  %1090 = vrot.lane.b32.xlu2 %v1087_v31, %s2413_s25  ;;  %v1185_v31 = vor.u32 %v1184_v39, %v1181_v34  ;;  %v1503_v55 = vor.u32 %v1501_v45, %v3028_v44  ;;  %v1176_v13 = vsel %vm2600_vm11, %v1167_v7, %v3023_v38  ;;  %v1255_v39 = vld [vmem:[%s2552_s28 + $0x18] sm:$0x8]  ;;  %v1277_v45 = vld [vmem:[%s2552_s28 + $0x1c] sm:$0xf] }
  0xe4   : > { %495 = vst.msk [vmem:[#allocation2 + $0x10] sm:$0xf] %vm256_vm8, %v491_v58  ;;  %v1512_v34 = vor.u32 %v1510_v54, %v1509_v11  ;;  %v1237_v44 = vrot.slane %v1235_v28, 4  ;;  %v1285_v49 = vshrl.u32 %v1277_v45, 16  ;;  %v1266_v14 = vrot.slane %v1257_v9, 7 }
  0xe5   : > { %516 = vst.msk [vmem:[#allocation2 + $0x10] sm:$0xf] %vm281_vm9, %v512_v46  ;;  %v549_v8 = vpop.permute.xlu2 %548  ;;  %v1186_v63 = vsel %vm2600_vm11, %v1177_v42, %v1185_v31  ;;  %v1504_v4 = vsel %vm2652_vm6, %v1969_v25, %v1503_v55  ;;  %v1226_v25 = vor.u32 %v1225_v36, %v1222_v35  ;;  %v1964_v31 = vrot.slane %v1255_v39, 11  ;;  %v1276_v55 = vld [vmem:[%s2552_s28 + $0x18] sm:$0x8] }
  0xe6   : > { %v1513_v0 = vsel %vm2652_vm6, %v1505_v33, %v1512_v34  ;;  %v1280_v61 = vshrl.u32 %v1276_v55, 16  ;;  %v1287_v62 = vrot.slane %v1285_v49, 7  ;;  %v1297_v19 = vshll.u32 %v1278_v12, 16  ;;  %v2107_v36 = vld [vmem:[%s2540_s20 + $0x28] sm:$0xff] }
  0xe7   : > { %v1227_v60 = vrot.slane %v1226_v25, 4 }
  0xe8   : > { %1462 = vrot.lane.b32.xlu0 %v1459_v1, %s2411_s30  ;;  %v1218_v1 = vld [vmem:[%s2552_s28 + $0x20] sm:$0x7]  ;;  %v1965_v5 = vrot.slane %v1280_v61, 11  ;;  %v1292_v26 = vrot.slane %v1287_v62, 4 }
  0xe9   : > { %1148 = vrot.lane.b32.xlu1 %v1144_v2, %s2408_s24  ;;  %v1239_v15 = vshrl.u32 %v1218_v1, 16 }
  0xea   : > { %v824_v21 = vpop.permute.xlu0 %823 }
  0xeb   : > { %v510_v29 = vpop.permute.xlu1 %509  ;;  %828 = vst.msk [vmem:[#allocation2 + $0x14] sm:$0xf] %vm392_vm14, %v824_v21  ;;  %1460 = vrot.lane.b32.xlu2 %v1449_v16, %s2411_s30  ;;  %v1242_v16 = vshll.u32 %v1218_v1, 16  ;;  %v1205_v21 = vrot.slane %v1203_v6, 4  ;;  %v1236_v6 = vsel %vm2623_vm0, %v1227_v60, %v1235_v28  ;;  %v2108_v28 = vld [vmem:[%s2540_s20 + $0x30] sm:$0xff] }
  0xec   : > { %515 = vst.msk [vmem:[#allocation2 + $0x4] sm:$0xf] %vm281_vm9, %v510_v29  ;;  %v1241_v29 = vrot.slane %v1239_v15, 6  ;;  %v1294_v15 = vshrl.u32 %v1278_v12, 16 }
  0xed   : > { %554 = vst.msk [vmem:[#allocation2 + $0x4] sm:$0xf] %vm324_vm12, %v549_v8  ;;  %v878_v46 = vpop.permute.xlu2 %877  ;;  %v1197_v8 = vld [vmem:[%s2552_s28 + $0x20] sm:$0x3] }
  0xee   : > { %v1206_v24 = vrot.slane %v1197_v8, 6  ;;  %v1296_v17 = vrot.slane %v1294_v15, 7 }
  0xf0   : > { %1481 = vrot.lane.b32.xlu0 %v1477_v30, %s2412_s21  ;;  %v1244_v30 = vrot.slane %v1242_v16, 7  ;;  %v1207_v38 = vsel %vm2554_vm4, %v1205_v21, %v1206_v24  ;;  %v2109_v24 = vld [vmem:[%s2540_s20 + $0x38] sm:$0xff] }
  0xf1   : > { %1483 = vrot.lane.b32.xlu1 %v1480_v43, %s2412_s21  ;;  %v1256_v43 = vld [vmem:[%s2552_s28 + $0x1c] sm:$0xf]  ;;  %2126 = vmatpush.bf16.msra.mxu3 %v2109_v24 }
  0xf2   : > { %v843_v51 = vpop.permute.xlu0 %842  ;;  %v1245_v47 = vor.u32 %v1244_v30, %v1241_v29  ;;  %1754 = vmatpush.bf16.msra.mxu0 %v2109_v24  ;;  %v1972_v24 = vld [vmem:[#allocation2] sm:$0xf] }
  0xf3   : > { %v845_v58 = vpop.permute.xlu1 %844  ;;  %848 = vst.msk [vmem:[#allocation2 + $0x8] sm:$0xf] %vm417_vm15, %v843_v51  ;;  %1150 = vrot.lane.b32.xlu2 %v1147_v18, %s2408_s24  ;;  %v1263_v18 = vrot.slane %v1256_v43, 7  ;;  %v2104_v43 = vld [vmem:[%s2540_s20 + $0x10] sm:$0xff] }
  0xf4   : > { %849 = vst.msk [vmem:[#allocation2 + $0x14] sm:$0xf] %vm417_vm15, %v845_v58  ;;  %v1246_v57 = vsel %vm2623_vm0, %v1237_v44, %v1245_v47  ;;  %v443_v58 = vrot.slane %v441_v48, 7  ;;  %v1097_v47 = vld [vmem:[%s2552_s28 + $0x1c] sm:$0xf]  ;;  %v2102_v48 = vld [vmem:[%s2540_s20] sm:$0xff] }
  0xf5   : > { %882 = vst.msk [vmem:[#allocation2 + $0x14] sm:$0xf] %vm454_vm2, %v878_v46  ;;  %v609_v2 = vpop.permute.xlu2 %608  ;;  %v1264_v7 = vsel %vm2632_vm1, %v1964_v31, %v1263_v18  ;;  %v1265_v22 = vrot.slane %v1263_v18, 4  ;;  %2127 = vmatpush.bf16.msra.mxu3 %v2108_v28  ;;  %v1096_v31 = vld [vmem:[%s2552_s28 + $0x18] sm:$0xf] }
  0xf6   : > { %1755 = vmatpush.bf16.msra.mxu0 %v2108_v28  ;;  %1099 = vst.msk [vmem:[#allocation2 + $0x28] sm:$0xf] %vm217_vm7, %v1097_v47 }
  0xf7   : > { %v1267_v54 = vsel %vm2632_vm1, %v1265_v22, %v1266_v14  ;;  %1098 = vst.msk [vmem:[#allocation2 + $0x1c] sm:$0xf] %vm217_vm7, %v1096_v31 }
  0xf8   : > { %1189 = vrot.lane.b32.xlu0 %v1186_v63, %s2410_s27  ;;  %v1288_v63 = vshll.u32 %v1277_v45, 16 }
  0xf9   : > { %1514 = vrot.lane.b32.xlu1 %v1504_v4, %s2413_s25  ;;  %v446_v4 = vor.u32 %v444_v59, %v443_v58  ;;  %2128 = vmatpush.bf16.msra.mxu3 %v2107_v36 }
  0xfa   : > { %v551_v20 = vpop.permute.xlu0 %550  ;;  %v1290_v8 = vor.u32 %v1288_v63, %v1287_v62  ;;  %1756 = vmatpush.bf16.msra.mxu0 %v2107_v36 }
  0xfb   : > { %v876_v27 = vpop.permute.xlu1 %875  ;;  %555 = vst.msk [vmem:[#allocation2 + $0x10] sm:$0xf] %vm324_vm12, %v551_v20  ;;  %1187 = vrot.lane.b32.xlu2 %v1176_v13, %s2410_s27  ;;  %v1310_v13 = vld [vmem:[%s2552_s28 + $0x20] sm:$0xf]  ;;  %v447_v37 = vsel %vm2652_vm6, %v439_v3, %v446_v4 }
  0xfc   : > { %881 = vst.msk [vmem:[#allocation2 + $0x8] sm:$0xf] %vm454_vm2, %v876_v27  ;;  %v2098_v46 = vld [vmem:[#allocation2 + $0x10] sm:$0xf0]  ;;  %v1291_v16 = vsel %vm2652_vm6, %v1965_v5, %v1290_v8  ;;  %v1299_v27 = vor.u32 %v1297_v19, %v1296_v17 }
  0xfd   : > { %v632_v23 = vpop.permute.xlu2 %631  ;;  %1312 = vst.msk [vmem:[#allocation2 + $0x2c] sm:$0xf] %vm217_vm7, %v1310_v13 }
  0xfe   : > { %v1300_v32 = vsel %vm2652_vm6, %v1292_v26, %v1299_v27 }
 0x100   : > { %1208 = vrot.lane.b32.xlu0 %v1204_v52, %s2407_s17 }
 0x101   : > { %1210 = vrot.lane.b32.xlu1 %v1207_v38, %s2407_s17  ;;  %v2106_v38 = vld [vmem:[%s2540_s20 + $0x20] sm:$0xff]  ;;  %s1829_s17 = scalar_lea.hbm %s3231_s2, %s2093_s12 }
 0x102   : > { %v570_v42 = vpop.permute.xlu0 %569  ;;  %2129 = vmatpush.bf16.msra.mxu3 %v2106_v38  ;;  %1757 = vmatpush.bf16.msra.mxu0 %v2106_v38  ;;  %s1832_s16 = sshll.u32 %s1829_s17, 4  ;;  %s1833_s16 = int_to_ptr.hbm [resolvable:$true] %s1832_s16 }
 0x103   : > { %v572_v50 = vpop.permute.xlu1 %571  ;;  %575 = vst.msk [vmem:[#allocation2 + $0x4] sm:$0xf] %vm349_vm13, %v570_v42  ;;  %v1980_v51 = vld [vmem:[#allocation2 + $0x8] sm:$0xf]  ;;  %1516 = vrot.lane.b32.xlu2 %v1513_v0, %s2413_s25  ;;  %s2295_s29 = sshra.s32 %s1833_s16, 4  ;;  %s2296_s29 = int_to_ptr.hbm [resolvable:$true] %s2295_s29 }
 0x104   : > { %576 = vst.msk [vmem:[#allocation2 + $0x10] sm:$0xf] %vm349_vm13, %v572_v50  ;;  %v1981_v56 = vor.u32 %v2098_v46, %v1980_v51  ;;  %v2103_v46 = vld [vmem:[%s2540_s20 + $0x8] sm:$0xff]  ;;  %s201_s20 = sand.u32 1, %s2367_s10   ;;  %s2297_s27 = scalar_lea.hbm %s2296_s29, 32 }
 0x105   : > { %614 = vst.msk [vmem:[#allocation2 + $0x4] sm:$0xf] %vm392_vm14, %v609_v2  ;;  %v915_v1 = vpop.permute.xlu2 %914  ;;  %s1944_s23 = sshll.u32 %s201_s20, 5  ;;  %s1816_s24 = scalar_lea.sflag [#allocation5], %s201_s20 }
 0x106   : > { %1800 = vmatmul.bf16.vlgmr.msra.gmra.mxu2 %v1981_v56  ;;  %920 = vst.msk [vmem:[#allocation2 + $0x18] sm:$0xf] %vm256_vm8, %v915_v1  ;;  %2130 = vmatpush.bf16.msra.mxu3 %v2105_v40  ;;  %s203_s18 = scalar_lea.vmem [#allocation6], %s1944_s23  ;;  %p2298_p7 = scmp.ne.s32.totalorder %s2296_s29, %s2297_s27 }
 0x107   : > { %1758 = vmatpush.bf16.msra.mxu0 %v2105_v40  ;;  %s1830_s15 = sshll.u32 %s203_s18, 4  ;;  %p2302_p13 = scmp.lt.s32.totalorder %s2296_s29, %s3231_s2  ;;  %s1831_s15 = int_to_ptr.vmem [resolvable:$true] %s1830_s15 }
 0x108   : > { %1249 = vrot.lane.b32.xlu0 %v1246_v57, %s2411_s30  ;;  %p2299_p10 = pnand %p2298_p7, %p2513_p12 }
 0x109   : > { %1268 = vrot.lane.b32.xlu1 %v1264_v7, %s2412_s21 }
 0x10a   : > { %v611_v2 = vpop.permute.xlu0 %610  ;;  %2131 = vmatpush.bf16.msra.mxu3 %v2104_v43  ;;  %p2300_p11 = pneg %p2299_p10 }
 0x10b   : > { %v630_v10 = vpop.permute.xlu1 %629  ;;  %615 = vst.msk [vmem:[#allocation2 + $0x10] sm:$0xf] %vm392_vm14, %v611_v2  ;;  %1247 = vrot.lane.b32.xlu2 %v1236_v6, %s2411_s30  ;;  %1759 = vmatpush.bf16.msra.mxu0 %v2104_v43 }
 0x10c   : > { %635 = vst.msk [vmem:[#allocation2 + $0x4] sm:$0xf] %vm417_vm15, %v630_v10 }
 0x10d   : > { %636 = vst.msk [vmem:[#allocation2 + $0x10] sm:$0xf] %vm417_vm15, %v632_v23  ;;  %v938_v11 = vpop.permute.xlu2 %937 }
 0x10e   : > { %2132 = vmatpush.bf16.msra.mxu3 %v2103_v46 }
 0x10f   : > { %1760 = vmatpush.bf16.msra.mxu0 %v2103_v46 }
 0x110   : > { %450 = vrot.lane.b32.xlu0 %v447_v37, %s2413_s25 }
 0x111   : > { %1301 = vrot.lane.b32.xlu1 %v1291_v16, %s2413_s25 }
 0x112   : > { %v663_v20 = vpop.permute.xlu0 %662  ;;  %2133 = vmatpush.bf16.msra.mxu3 %v2102_v48 }
 0x113   : > { %v665_v21 = vpop.permute.xlu1 %664  ;;  %668 = vst.msk [vmem:[#allocation2 + $0x4] sm:$0xf] %vm454_vm2, %v663_v20  ;;  %1270 = vrot.lane.b32.xlu2 %v1267_v54, %s2412_s21  ;;  %1761 = vmatpush.bf16.msra.mxu0 %v2102_v48 }
 0x114   : > { %669 = vst.msk [vmem:[#allocation2 + $0x10] sm:$0xf] %vm454_vm2, %v665_v21 }
 0x115   : > { %v1341_v52 = vpop.permute.xlu2 %1340 }
 0x116   : > { %1346 = vst.msk [vmem:[#allocation2 + $0x20] sm:$0xf] %vm256_vm8, %v1341_v52 }
 0x11a   : > { %v917_v29 = vpop.permute.xlu0 %916  ;;  %v2096_v30 = vld [vmem:[#allocation2 + $0x4] sm:$0xf] }
 0x11b   : > { %v936_v33 = vpop.permute.xlu1 %935  ;;  %921 = vst.msk [vmem:[#allocation2 + $0x24] sm:$0xf] %vm256_vm8, %v917_v29  ;;  %v1974_v34 = vld [vmem:[#allocation2 + $0xc] sm:$0xf0]  ;;  %1303 = vrot.lane.b32.xlu2 %v1300_v32, %s2413_s25  ;;  %s2301_s25 = scalar_lea.hbm %s3231_s2, 128 }
 0x11c   : > { %941 = vst.msk [vmem:[#allocation2 + $0x18] sm:$0xf] %vm281_vm9, %v936_v33  ;;  %v1977_v35 = vor.u32 %v2096_v30, %v1974_v34  ;;  %p2303_p0 = scmp.lt.s32.totalorder %s2301_s25, %s2297_s27 }
 0x11d   : > { %942 = vst.msk [vmem:[#allocation2 + $0x24] sm:$0xf] %vm281_vm9, %v938_v11  ;;  %v998_v53 = vpop.permute.xlu2 %997 }
 0x11e   : > { %1781 = vmatmul.bf16.vlgmr.msra.gmra.mxu1 %v1977_v35  ;;  %p2304_p1 = por %p2303_p0, %p2302_p13 }
 0x120   : > { %p2305_p4 = pnand %p2304_p1, %p2300_p11 }
 0x122   : > { %v975_v39 = vpop.permute.xlu0 %974 }
 0x123   : > { %v977_v23 = vpop.permute.xlu1 %976  ;;  %980 = vst.msk [vmem:[#allocation2 + $0x18] sm:$0xf] %vm324_vm12, %v975_v39 }
 0x124   : > { %981 = vst.msk [vmem:[#allocation2 + $0x24] sm:$0xf] %vm324_vm12, %v977_v23 }
 0x125   : > { %1002 = vst.msk [vmem:[#allocation2 + $0x24] sm:$0xf] %vm349_vm13, %v998_v53  ;;  %v1035_v41 = vpop.permute.xlu2 %1034 }
 0x12a   : > { %v1343_v45 = vpop.permute.xlu0 %1342 }
 0x12b   : > { %v996_v44 = vpop.permute.xlu1 %995  ;;  %1347 = vst.msk [vmem:[#allocation2 + $0x2c] sm:$0xf] %vm256_vm8, %v1343_v45 }
 0x12c   : > { %1001 = vst.msk [vmem:[#allocation2 + $0x18] sm:$0xf] %vm349_vm13, %v996_v44 }
 0x12d   : > { %1040 = vst.msk [vmem:[#allocation2 + $0x18] sm:$0xf] %vm392_vm14, %v1035_v41  ;;  %v1403_v0 = vpop.permute.xlu2 %1402 }
 0x132   : > { %v1362_v25 = vpop.permute.xlu0 %1361 }
 0x133   : > { %v1364_v42 = vpop.permute.xlu1 %1363  ;;  %1367 = vst.msk [vmem:[#allocation2 + $0x20] sm:$0xf] %vm281_vm9, %v1362_v25 }
 0x134   : > { %1368 = vst.msk [vmem:[#allocation2 + $0x2c] sm:$0xf] %vm281_vm9, %v1364_v42 }
 0x135   : > { %1407 = vst.msk [vmem:[#allocation2 + $0x2c] sm:$0xf] %vm324_vm12, %v1403_v0  ;;  %v1422_v18 = vpop.permute.xlu2 %1421 }
 0x13a   : > { %v1037_v49 = vpop.permute.xlu0 %1036 }
 0x13b   : > { %v1401_v50 = vpop.permute.xlu1 %1400  ;;  %1041 = vst.msk [vmem:[#allocation2 + $0x24] sm:$0xf] %vm392_vm14, %v1037_v49 }
 0x13c   : > { %1406 = vst.msk [vmem:[#allocation2 + $0x20] sm:$0xf] %vm324_vm12, %v1401_v50 }
 0x13d   : > { %1427 = vst.msk [vmem:[#allocation2 + $0x20] sm:$0xf] %vm349_vm13, %v1422_v18  ;;  %v1091_v51 = vpop.permute.xlu2 %1090 }
 0x142   : > { %v1056_v55 = vpop.permute.xlu0 %1055 }
 0x143   : > { %v1058_v56 = vpop.permute.xlu1 %1057  ;;  %1061 = vst.msk [vmem:[#allocation2 + $0x18] sm:$0xf] %vm417_vm15, %v1056_v55 }
 0x144   : > { %1062 = vst.msk [vmem:[#allocation2 + $0x24] sm:$0xf] %vm417_vm15, %v1058_v56 }
 0x145   : > { %1095 = vst.msk [vmem:[#allocation2 + $0x24] sm:$0xf] %vm454_vm2, %v1091_v51  ;;  %v1461_v57 = vpop.permute.xlu2 %1460 }
 0x146   : > { %1466 = vst.msk [vmem:[#allocation2 + $0x20] sm:$0xf] %vm392_vm14, %v1461_v57 }
 0x14a   : > { %v1424_v58 = vpop.permute.xlu0 %1423 }
 0x14b   : > { %v1089_v59 = vpop.permute.xlu1 %1088  ;;  %1428 = vst.msk [vmem:[#allocation2 + $0x2c] sm:$0xf] %vm349_vm13, %v1424_v58 }
 0x14c   : > { %1094 = vst.msk [vmem:[#allocation2 + $0x18] sm:$0xf] %vm454_vm2, %v1089_v59  ;;  %v2100_v7 = vld [vmem:[#allocation2 + $0x20] sm:$0xf0] }
 0x14d   : > { %v1151_v60 = vpop.permute.xlu2 %1150 }
 0x152   : > { %v1128_v61 = vpop.permute.xlu0 %1127 }
 0x153   : > { %v1130_v62 = vpop.permute.xlu1 %1129  ;;  %1133 = vst.msk [vmem:[#allocation2 + $0x1c] sm:$0xf] %vm256_vm8, %v1128_v61  ;;  %v1984_v63 = vld [vmem:[#allocation2 + $0x18] sm:$0xf] }
 0x154   : > { %1134 = vst.msk [vmem:[#allocation2 + $0x28] sm:$0xf] %vm256_vm8, %v1130_v62  ;;  %v1985_v1 = vor.u32 %v2100_v7, %v1984_v63 }
 0x155   : > { %1155 = vst.msk [vmem:[#allocation2 + $0x28] sm:$0xf] %vm281_vm9, %v1151_v60  ;;  %v1188_v3 = vpop.permute.xlu2 %1187 }
 0x156   : > { %1767 = vmatmul.bf16.vlgmr.msra.gmra.mxu3 %v1985_v1 }
 0x15a   : > { %v1463_v4 = vpop.permute.xlu0 %1462 }
 0x15b   : > { %v1149_v6 = vpop.permute.xlu1 %1148  ;;  %1467 = vst.msk [vmem:[#allocation2 + $0x2c] sm:$0xf] %vm392_vm14, %v1463_v4 }
 0x15c   : > { %1154 = vst.msk [vmem:[#allocation2 + $0x1c] sm:$0xf] %vm281_vm9, %v1149_v6 }
 0x15d   : > { %1193 = vst.msk [vmem:[#allocation2 + $0x1c] sm:$0xf] %vm324_vm12, %v1188_v3  ;;  %v1517_v2 = vpop.permute.xlu2 %1516 }
 0x162   : > { %v1482_v5 = vpop.permute.xlu0 %1481 }
 0x163   : > { %v1484_v8 = vpop.permute.xlu1 %1483  ;;  %1487 = vst.msk [vmem:[#allocation2 + $0x20] sm:$0xf] %vm417_vm15, %v1482_v5 }
 0x164   : > { %1488 = vst.msk [vmem:[#allocation2 + $0x2c] sm:$0xf] %vm417_vm15, %v1484_v8 }
 0x165   : > { %1521 = vst.msk [vmem:[#allocation2 + $0x2c] sm:$0xf] %vm454_vm2, %v1517_v2  ;;  %v1248_v9 = vpop.permute.xlu2 %1247 }
 0x16a   : > { %v1190_v12 = vpop.permute.xlu0 %1189 }
 0x16b   : > { %v1515_v10 = vpop.permute.xlu1 %1514  ;;  %1194 = vst.msk [vmem:[#allocation2 + $0x28] sm:$0xf] %vm324_vm12, %v1190_v12 }
 0x16c   : > { %1520 = vst.msk [vmem:[#allocation2 + $0x20] sm:$0xf] %vm454_vm2, %v1515_v10  ;;  %v2101_v13 = vld [vmem:[#allocation2 + $0x28] sm:$0xf0] }
 0x16d   : > { %v1271_v37 = vpop.permute.xlu2 %1270 }
 0x172   : > { %v1209_v22 = vpop.permute.xlu0 %1208 }
 0x173   : > { %v1211_v14 = vpop.permute.xlu1 %1210  ;;  %1214 = vst.msk [vmem:[#allocation2 + $0x1c] sm:$0xf] %vm349_vm13, %v1209_v22  ;;  %v1992_v15 = vld [vmem:[#allocation2 + $0x20] sm:$0xf] }
 0x174   : > { %1215 = vst.msk [vmem:[#allocation2 + $0x28] sm:$0xf] %vm349_vm13, %v1211_v14  ;;  %v1993_v16 = vor.u32 %v2101_v13, %v1992_v15 }
 0x175   : > { %1253 = vst.msk [vmem:[#allocation2 + $0x1c] sm:$0xf] %vm392_vm14, %v1248_v9  ;;  %v1304_v17 = vpop.permute.xlu2 %1303 }
 0x176   : > { %1805 = vmatmul.bf16.gmra.mxu2 %v1993_v16 }
 0x17a   : > { %v1250_v11 = vpop.permute.xlu0 %1249 }
 0x17b   : > { %v1269_v54 = vpop.permute.xlu1 %1268  ;;  %1254 = vst.msk [vmem:[#allocation2 + $0x28] sm:$0xf] %vm392_vm14, %v1250_v11 }
 0x17c   : > { %1274 = vst.msk [vmem:[#allocation2 + $0x1c] sm:$0xf] %vm417_vm15, %v1269_v54 }
 0x17d   : > { %1275 = vst.msk [vmem:[#allocation2 + $0x28] sm:$0xf] %vm417_vm15, %v1271_v37 }
 0x17e   : > { %1308 = vst.msk [vmem:[#allocation2 + $0x28] sm:$0xf] %vm454_vm2, %v1304_v17 }
 0x182   : > { %v451_v19 = vpop.permute.xlu0 %450 }
 0x183   : > { %v1302_v20 = vpop.permute.xlu1 %1301  ;;  %456 = vst.msk [vmem:[#allocation2 + $0xc] sm:$0xf] %vm454_vm2, %v451_v19 }
 0x184   : > { %1307 = vst.msk [vmem:[#allocation2 + $0x1c] sm:$0xf] %vm454_vm2, %v1302_v20 }
 0x185   : > { %v1986_v21 = vld [vmem:[#allocation2 + $0x24] sm:$0xf0] }
 0x189   : > { %v1801_v32 = vpop.f32.mrf.mxu2 }
 0x18a   : > { %v2097_v26 = vld [vmem:[#allocation2 + $0x8] sm:$0xf0] }
 0x18b   : > { %v1973_v27 = vor.u32 %v2097_v26, %v1972_v24  ;;  %v2099_v52 = vld [vmem:[#allocation2 + $0x1c] sm:$0xf] }
 0x18c   : > { %v1989_v28 = vor.u32 %v2099_v52, %v1986_v21 }
 0x18d   : > { %1762 = vmatmul.bf16.vlgmr.msra.gmra.mxu0 %v1973_v27 }
 0x18e   : > { %1786 = vmatmul.bf16.gmra.mxu1 %v1989_v28 }
 0x191   : > { %v1803_v30 = vpop.f32.mrf.mxu2 }
 0x19b   : > { %v1782_v29 = vpop.f32.mrf.mxu1 }
 0x1a3   : > { %v1784_v33 = vpop.f32.mrf.mxu1 }
 0x1d9   : > { %v1768_v34 = vpop.f32.mrf.mxu3 }
 0x1e1   : > { %v1770_v43 = vpop.f32.mrf.mxu3 }
 0x1f9   : > { %v1806_v36 = vpop.f32.mrf.mxu2 }
 0x201   : > { %v1808_v47 = vpop.f32.mrf.mxu2 }
 0x20a   : > { %v1763_v35 = vpop.f32.mrf.mxu0 }
 0x20b   : > { %v1783_v53 = vadd.f32 %v1782_v29, %v1763_v35  ;;  %v1787_v38 = vpop.f32.mrf.mxu1 }
 0x20c   : > { %v1788_v39 = vadd.f32 %v1787_v38, %v1768_v34 }
 0x20d   : > { %v1802_v23 = vadd.f32 %v1801_v32, %v1783_v53 }
 0x20e   : > { %v1807_v40 = vadd.f32 %v1806_v36, %v1788_v39 }
 0x20f   : > { %1811 = vst [vmem:[%s203_s18] sm:$0xff] %v1802_v23 }
 0x210   : > { %1813 = vst [vmem:[%s203_s18 + $0x10] sm:$0xff] %v1807_v40 }
 0x212   : > { %v1765_v41 = vpop.f32.mrf.mxu0 }
 0x213   : > { %v1785_v45 = vadd.f32 %v1784_v33, %v1765_v41  ;;  %v1789_v44 = vpop.f32.mrf.mxu1 }
 0x214   : > { %v1790_v46 = vadd.f32 %v1789_v44, %v1770_v43 }
 0x215   : > { %v1804_v0 = vadd.f32 %v1803_v30, %v1785_v45 }
 0x216   : > { %v1809_v48 = vadd.f32 %v1808_v47, %v1790_v46 }
 0x217   : > { %1812 = vst [vmem:[%s203_s18 + $0x8] sm:$0xff] %v1804_v0 }
 0x218   : > { %1814 = vst [vmem:[%s203_s18 + $0x18] sm:$0xff] %v1809_v48 }
 0x219   : > { %2308 = shalt.err (!%p2305_p4)
}
 0x21a   : > { %s2414_s20 = smov 128   ;;  %s2415_s23 = smov 8  }
 0x21b   : > { %2140 = dma.vmem_to_hbm [thread:$0]  (%p2513_p12), %s1831_s15, 512, %s1833_s16, %s1816_s24, %s2414_s20, %s2414_s20, %s2415_s23  }
 0x21c PF: > { %p2151_p5 = scmp.ge.s32.totalorder %s2403_s19, 2  ;;  %s1847_s8 = sand.u32 1, %s2363_s9  }
 0x21d   : > { %s1848_s12 = scalar_lea.sflag [#allocation5], %s1847_s8 }
 0x21e   : > { %p2147_p6 = pnand %p2151_p5, %p2526_p2 }
 0x220   : > { %p2148_p8 = pneg %p2147_p6 }
 0x222   : > { %2358 = dma.done.wait (%p2148_p8), %s1848_s12, 512  }
 0x223   : > { %2360 = vsyncadd (%p2148_p8), %s1848_s12, 4294966784  ;;  %s18_s19 = sadd.s32 1, %s2403_s19   ;;  %s3258_s15 = sld [smem:[#allocation9_spill]] }
 0x224   : > { %p15_p3 = scmp.ge.s32.totalorder %s18_s19, 6   ;;  %s3259_s16 = sld [smem:[#allocation10_spill]] }
 0x225   : > { %s3260_s17 = sld [smem:[#allocation11_spill]]  ;;  %s3262_s9 = smov %s2367_s10 }
 0x226   : > { %s3261_s18 = sld [smem:[#allocation12_spill]]  ;;  %s3263_s10 = smov %s2371_s11 }
 0x227   : > { %s3264_s11 = smov %s2521_s5  ;;  %s3265_s12 = smov %s2379_s13 }
 0x228   : > { %s3266_s13 = smov %s2383_s14  ;;  %s3267_s14 = smov %s2518_s4 }
 0x229   :  { %17 = sbr.rel (!%p15_p3) target bundleno = 9 (0x9), region = 76 }
 0x22e   :  { %1854 = vsyncpa [#allocation4], 1 }
 0x22f   :  { %1856 = vsyncpa [#allocation4 + $0x1], 1 }
 0x230   :  { %1857 = vsyncpa [#allocation5], 1 }
 0x231   :  { %1859 = vsyncpa [#allocation5 + $0x1], 1 }

</bundles_post_ra>
